<compile_context>
chip_gen: v5e
topology: v5e:2x2
jax: 0.10.0
libtpu: 0.0.40
codegen_flags: <defaults>
</compile_context>

<pallas_src>
import functools

import jax
import jax.numpy as jnp
from jax import lax
from jax.experimental import pallas as pl
from jax.experimental.pallas import tpu as pltpu


def _mhca_kernel(q_ref, k_ref, v_ref,
                 wq_ref, wk_ref, wv_ref,
                 bq_ref, bk_ref, bv_ref,
                 o_ref,
                 k_scr, v_scr,
                 *, num_heads, approx_recip):
    """One (batch, query-tile) grid step.

    q_ref : (1, Tq, E)   query rows for this tile (mxu dtype)
    k_ref : (1, Nk, E)   all key rows of this batch element
    v_ref : (1, Nk, E)   all value rows of this batch element
    w*_ref: (H, E, Dh)   head-major, pre-transposed (contract E); Wq has
                         the 1/sqrt(Dh) scale folded in
    b*_ref: (H, 1, Dh)   float32 biases; bq has the scale folded in
    o_ref : (1, Tq, E)
    k_scr/v_scr: (H, Nk, Dh) projected K/V, persists across the query tiles
                 of one batch element (written at qi == 0 only).
    """
    qi = pl.program_id(1)

    # ---- K/V projections: only once per batch element ----------------------
    @pl.when(qi == 0)
    def _():
        xk = k_ref[0]                                   # (Nk, E)
        xv = v_ref[0]
        for h in range(num_heads):                      # static unroll, leading-axis head index
            kh = jnp.dot(xk, wk_ref[h], preferred_element_type=jnp.float32)
            vh = jnp.dot(xv, wv_ref[h], preferred_element_type=jnp.float32)
            k_scr[h] = (kh + bk_ref[h]).astype(k_scr.dtype)
            v_scr[h] = (vh + bv_ref[h]).astype(v_scr.dtype)

    xq = q_ref[0]                                       # (Tq, E)
    mxu_dtype = xq.dtype

    head_outputs = []
    for h in range(num_heads):
        # Q projection for this head (scale already folded into wq/bq).
        qh = jnp.dot(xq, wq_ref[h], preferred_element_type=jnp.float32)
        qh = (qh + bq_ref[h]).astype(mxu_dtype)         # (Tq, Dh)

        kh = k_scr[h]                                   # (Nk, Dh)
        vh = v_scr[h]

        # scores = Q_h @ K_h^T  -> (Tq, Nk), f32 accumulation on the MXU.
        s = lax.dot_general(qh, kh, (((1,), (1,)), ((), ())),
                            preferred_element_type=jnp.float32)

        # Numerically stable softmax; normalization deferred to the (Tq, Dh)
        # output so the divide is Dh-wide (EUP reciprocal) instead of Nk-wide.
        s = s - jnp.max(s, axis=-1, keepdims=True)
        p = jnp.exp(s)
        row_sum = jnp.sum(p, axis=-1, keepdims=True)    # (Tq, 1)

        o_h = jnp.dot(p.astype(mxu_dtype), vh,
                      preferred_element_type=jnp.float32)   # (Tq, Dh)
        o_h = o_h * pl.reciprocal(row_sum, approx=approx_recip)
        head_outputs.append(o_h)

    # Concatenate heads (== transpose(1,2).view(B,N,E)) and make one
    # lane-dense (Tq, E) store.
    o_ref[0] = jnp.concatenate(head_outputs, axis=-1).astype(o_ref.dtype)


def _vmem_limit_bytes(est_vmem):
    """Generation-aware scoped-VMEM limit: headroom over the estimate, capped
    at ~85% of this chip's physical per-core VMEM (64 MiB v7x / 128 MiB v5e-v6e)."""
    try:
        cap = int(pltpu.get_tpu_info().vmem_capacity_bytes)
    except Exception:
        cap = 64 * 1024 * 1024          # conservative fallback (v7x)
    hard_cap = int(cap * 0.85)
    want = max(int(est_vmem * 3 // 2), 32 * 1024 * 1024)
    return min(want, hard_cap)


def multi_head_cross_attention(query, key, value, params, *, num_heads,
                               block_q=None, mxu_dtype=jnp.bfloat16):
    """query/key/value: (B, N, E); params: wq/wk/wv (E,E) PyTorch layout, bq/bk/bv (E,).

    mxu_dtype: operand dtype for the MXU (accumulation is always f32).
    bf16 is the fast path on v6e/v7x; pass jnp.float32 for bit-accurate math.
    """
    B, Nq, E = query.shape
    Bk, Nk, Ek = key.shape
    assert value.shape == key.shape and Bk == B and Ek == E
    assert E % num_heads == 0
    H = num_heads
    Dh = E // H
    scale = float(Dh) ** -0.5
    out_dtype = query.dtype

    if mxu_dtype is None:
        mxu_dtype = query.dtype
    mxu_dtype = jnp.dtype(mxu_dtype)
    approx_recip = bool(mxu_dtype != jnp.dtype(jnp.float32))

    # Query-row tile: 256 suits v6e/v7x's 256-wide MXU; 128 is preferred on
    # v5e (override via block_q).  Fall back to the full sequence when small.
    if block_q is None:
        if Nq % 256 == 0 and Nq > 256:
            block_q = 256
        elif Nq % 128 == 0 and Nq > 128:
            block_q = 128
        else:
            block_q = Nq
    assert Nq % block_q == 0

    # ---- weight / bias preprocessing (once per call, outside the kernel) ----
    def head_major(w):                 # (E_out, E_in) -> (H, E_in, Dh)
        return jnp.transpose(w.reshape(H, Dh, E), (0, 2, 1))

    wq_hm = (head_major(params["wq"]) * scale).astype(mxu_dtype)   # scale folded
    wk_hm = head_major(params["wk"]).astype(mxu_dtype)
    wv_hm = head_major(params["wv"]).astype(mxu_dtype)
    bq_hm = (params["bq"].reshape(H, 1, Dh) * scale).astype(jnp.float32)
    bk_hm = params["bk"].reshape(H, 1, Dh).astype(jnp.float32)
    bv_hm = params["bv"].reshape(H, 1, Dh).astype(jnp.float32)

    q_in = query.astype(mxu_dtype)
    k_in = key.astype(mxu_dtype)
    v_in = value.astype(mxu_dtype)

    # ---- VMEM budget: pipelined buffers + persistent scratch + f32 temps ----
    mb = mxu_dtype.itemsize
    est_vmem = (
        2 * block_q * E * mb                 # query tile (double-buffered)
        + 2 * 2 * Nk * E * mb                # key + value blocks (double-buffered)
        + 2 * 3 * E * E * mb                 # weights (worst case: double-buffered)
        + 2 * 3 * H * max(Dh, 128) * 4       # biases (lane-padded)
        + 2 * Nk * E * mb                    # persistent K/V scratch (H*Nk*Dh x2)
        + 2 * block_q * E * 4                # output tile (double-buffered)
        + block_q * Nk * 4                   # per-head scores temp (f32)
        + 2 * block_q * E * 4                # q-proj + concat temps (f32)
        + Nk * E * 4                         # K/V projection f32 temps at qi==0
    )
    vmem_limit = _vmem_limit_bytes(est_vmem)

    grid = (B, Nq // block_q)
    kernel = functools.partial(_mhca_kernel, num_heads=H,
                               approx_recip=approx_recip)

    def build(single_buffer_invariants):
        def inv_spec(shape):
            # Grid-invariant operands (weights/biases): single-buffer them so
            # VMEM isn't wasted on a second copy that never changes.
            if single_buffer_invariants:
                return pl.BlockSpec(shape, lambda b, qi: (0,) * len(shape),
                                    pipeline_mode=pl.Buffered(1))
            return pl.BlockSpec(shape, lambda b, qi: (0,) * len(shape))

        return pl.pallas_call(
            kernel,
            out_shape=jax.ShapeDtypeStruct((B, Nq, E), out_dtype),
            grid_spec=pltpu.PrefetchScalarGridSpec(
                num_scalar_prefetch=0,
                grid=grid,
                in_specs=[
                    pl.BlockSpec((1, block_q, E), lambda b, qi: (b, qi, 0)),  # query tile
                    pl.BlockSpec((1, Nk, E), lambda b, qi: (b, 0, 0)),        # keys (per batch)
                    pl.BlockSpec((1, Nk, E), lambda b, qi: (b, 0, 0)),        # values
                    inv_spec((H, E, Dh)),     # Wq (head-major, scale folded)
                    inv_spec((H, E, Dh)),     # Wk
                    inv_spec((H, E, Dh)),     # Wv
                    inv_spec((H, 1, Dh)),     # bq (scale folded)
                    inv_spec((H, 1, Dh)),     # bk
                    inv_spec((H, 1, Dh)),     # bv
                ],
                out_specs=pl.BlockSpec((1, block_q, E), lambda b, qi: (b, qi, 0)),
                scratch_shapes=[
                    pltpu.VMEM((H, Nk, Dh), mxu_dtype),   # projected K (per batch elem)
                    pltpu.VMEM((H, Nk, Dh), mxu_dtype),   # projected V
                ],
            ),
            compiler_params=pltpu.CompilerParams(
                # batch axis megacore-parallel; query-tile axis must stay
                # "arbitrary" because it carries the cached K/V scratch.
                dimension_semantics=("parallel", "arbitrary"),
                vmem_limit_bytes=vmem_limit,
            ),
        )

    args = (q_in, k_in, v_in, wq_hm, wk_hm, wv_hm, bq_hm, bk_hm, bv_hm)
    try:
        return build(True)(*args)
    except Exception:
        # pl.Buffered(1) (single-buffered invariants) not supported on this
        # jax version -> fall back to default double buffering.
        return build(False)(*args)


def init_params(key, embed_dim):
    """Mirror nn.Linear default init: U(-1/sqrt(fan_in), 1/sqrt(fan_in))."""
    bound = 1.0 / (embed_dim ** 0.5)
    ks = jax.random.split(key, 6)

    def u(k, shape):
        return jax.random.uniform(k, shape, jnp.float32, -bound, bound)

    return {
        "wq": u(ks[0], (embed_dim, embed_dim)), "bq": u(ks[1], (embed_dim,)),
        "wk": u(ks[2], (embed_dim, embed_dim)), "bk": u(ks[3], (embed_dim,)),
        "wv": u(ks[4], (embed_dim, embed_dim)), "bv": u(ks[5], (embed_dim,)),
    }


def reference_mhca(query, key, value, params, *, num_heads):
    """Plain-JAX reference of the PyTorch forward."""
    B, Nq, E = query.shape
    Nk = key.shape[1]
    Dh = E // num_heads
    scale = float(Dh) ** -0.5
    hp = jax.lax.Precision.HIGHEST

    def lin(x, w, b):
        return jnp.einsum("bne,oe->bno", x, w, precision=hp) + b

    Q = lin(query, params["wq"], params["bq"]).reshape(B, Nq, num_heads, Dh).transpose(0, 2, 1, 3)
    K = lin(key, params["wk"], params["bk"]).reshape(B, Nk, num_heads, Dh).transpose(0, 2, 1, 3)
    V = lin(value, params["wv"], params["bv"]).reshape(B, Nk, num_heads, Dh).transpose(0, 2, 1, 3)

    s = jnp.einsum("bhqd,bhkd->bhqk", Q, K, precision=hp) * scale
    p = jax.nn.softmax(s, axis=-1)
    o = jnp.einsum("bhqk,bhkd->bhqd", p, V, precision=hp)
    return o.transpose(0, 2, 1, 3).reshape(B, Nq, E)


if __name__ == "__main__":
    key0 = jax.random.PRNGKey(0)
    kq, kk, kv, kp = jax.random.split(key0, 4)

    batch, seq, embed_dim, num_heads = 2, 8, 32, 4

    query = jax.random.normal(kq, (batch, seq, embed_dim), dtype=jnp.float32)
    key_in = jax.random.normal(kk, (batch, seq, embed_dim), dtype=jnp.float32)
    value = jax.random.normal(kv, (batch, seq, embed_dim), dtype=jnp.float32)
    params = init_params(kp, embed_dim)

    # ---- run 1: f32 MXU operands, tight check against the f32 reference ----
    out_f32 = multi_head_cross_attention(query, key_in, value, params,
                                         num_heads=num_heads,
                                         mxu_dtype=jnp.float32)
    out_f32 = jax.block_until_ready(out_f32)
    ref = reference_mhca(query, key_in, value, params, num_heads=num_heads)
    assert out_f32.shape == (batch, seq, embed_dim)
    err = float(jnp.max(jnp.abs(out_f32 - ref)))
    assert jnp.allclose(out_f32, ref, atol=1e-4, rtol=1e-4), f"f32 max_err={err}"

    # ---- run 2: bf16 MXU operands (v6e/v7x fast path), f32 accumulation ----
    out_bf16 = multi_head_cross_attention(query, key_in, value, params,
                                          num_heads=num_heads,
                                          mxu_dtype=jnp.bfloat16)
    out_bf16 = jax.block_until_ready(out_bf16)

    def rt(x):  # round-trip through bf16, matching the kernel's operand cast
        return x.astype(jnp.bfloat16).astype(jnp.float32)

    ref_bf = reference_mhca(rt(query), rt(key_in), rt(value),
                            {k: rt(v) for k, v in params.items()},
                            num_heads=num_heads)
    err_bf = float(jnp.max(jnp.abs(out_bf16 - ref_bf)))
    assert jnp.allclose(out_bf16, ref_bf, atol=3e-2, rtol=3e-2), \
        f"bf16 max_err={err_bf}"

    print("KERNEL_OK")
</pallas_src>

<mosaic_0001>
module attributes {stable_mosaic.version = 11 : i64} {
  func.func @_mhca_kernel(%arg0: i32, %arg1: i32, %arg2: memref<1x8x32xf32, #tpu.memory_space<vmem>>, %arg3: memref<1x8x32xf32, #tpu.memory_space<vmem>>, %arg4: memref<1x8x32xf32, #tpu.memory_space<vmem>>, %arg5: memref<4x32x8xf32, #tpu.memory_space<vmem>>, %arg6: memref<4x32x8xf32, #tpu.memory_space<vmem>>, %arg7: memref<4x32x8xf32, #tpu.memory_space<vmem>>, %arg8: memref<4x1x8xf32, #tpu.memory_space<vmem>>, %arg9: memref<4x1x8xf32, #tpu.memory_space<vmem>>, %arg10: memref<4x1x8xf32, #tpu.memory_space<vmem>>, %arg11: memref<1x8x32xf32, #tpu.memory_space<vmem>>, %arg12: memref<4x8x8xf32, #tpu.memory_space<vmem>>, %arg13: memref<4x8x8xf32, #tpu.memory_space<vmem>>) attributes {dimension_semantics = [#tpu.dimension_semantics<parallel>, #tpu.dimension_semantics<arbitrary>], iteration_bounds = array<i64: 2, 1>, scalar_prefetch = 0 : i64, scratch_operands = 2 : i64, tpu.core_type = #tpu.core_type<tc>, window_params = [{transform_indices = @transform_0, window_bounds = array<i64: 1, 8, 32>}, {transform_indices = @transform_1, window_bounds = array<i64: 1, 8, 32>}, {transform_indices = @transform_2, window_bounds = array<i64: 1, 8, 32>}, {pipeline_mode = #tpu.pipeline_mode<synchronous>, transform_indices = @transform_3, window_bounds = array<i64: 4, 32, 8>}, {pipeline_mode = #tpu.pipeline_mode<synchronous>, transform_indices = @transform_4, window_bounds = array<i64: 4, 32, 8>}, {pipeline_mode = #tpu.pipeline_mode<synchronous>, transform_indices = @transform_5, window_bounds = array<i64: 4, 32, 8>}, {pipeline_mode = #tpu.pipeline_mode<synchronous>, transform_indices = @transform_6, window_bounds = array<i64: 4, 1, 8>}, {pipeline_mode = #tpu.pipeline_mode<synchronous>, transform_indices = @transform_7, window_bounds = array<i64: 4, 1, 8>}, {pipeline_mode = #tpu.pipeline_mode<synchronous>, transform_indices = @transform_8, window_bounds = array<i64: 4, 1, 8>}, {transform_indices = @transform_9, window_bounds = array<i64: 1, 8, 32>}]} {
    %c0_i32 = arith.constant 0 : i32
    %0 = arith.cmpi eq, %arg1, %c0_i32 : i32
    %1 = arith.extui %0 : i1 to i32
    %c0_i32_0 = arith.constant 0 : i32
    %2 = arith.cmpi ne, %1, %c0_i32_0 : i32
    scf.if %2 {
      %c0_70 = arith.constant 0 : index
      %c0_71 = arith.constant 0 : index
      %c0_72 = arith.constant 0 : index
      %101 = vector.load %arg3[%c0_70, %c0_71, %c0_72] : memref<1x8x32xf32, #tpu.memory_space<vmem>>, vector<1x8x32xf32>
      %102 = vector.shape_cast %101 : vector<1x8x32xf32> to vector<8x32xf32>
      %c0_73 = arith.constant 0 : index
      %c0_74 = arith.constant 0 : index
      %c0_75 = arith.constant 0 : index
      %103 = vector.load %arg4[%c0_73, %c0_74, %c0_75] : memref<1x8x32xf32, #tpu.memory_space<vmem>>, vector<1x8x32xf32>
      %104 = vector.shape_cast %103 : vector<1x8x32xf32> to vector<8x32xf32>
      %c0_76 = arith.constant 0 : index
      %c0_77 = arith.constant 0 : index
      %c0_78 = arith.constant 0 : index
      %105 = vector.load %arg6[%c0_76, %c0_77, %c0_78] : memref<4x32x8xf32, #tpu.memory_space<vmem>>, vector<1x32x8xf32>
      %106 = vector.shape_cast %105 : vector<1x32x8xf32> to vector<32x8xf32>
      %cst_79 = arith.constant dense<0.000000e+00> : vector<8x8xf32>
      %107 = tpu.matmul %102, %106, %cst_79 {dimension_numbers = #tpu.dot_dimension_numbers<[1], [0], [0], [1], [0, 0, 1, 1], [], []>} : vector<8x32xf32>, vector<32x8xf32>, vector<8x8xf32> -> vector<8x8xf32>
      %c0_80 = arith.constant 0 : index
      %c0_81 = arith.constant 0 : index
      %c0_82 = arith.constant 0 : index
      %108 = vector.load %arg7[%c0_80, %c0_81, %c0_82] : memref<4x32x8xf32, #tpu.memory_space<vmem>>, vector<1x32x8xf32>
      %109 = vector.shape_cast %108 : vector<1x32x8xf32> to vector<32x8xf32>
      %cst_83 = arith.constant dense<0.000000e+00> : vector<8x8xf32>
      %110 = tpu.matmul %104, %109, %cst_83 {dimension_numbers = #tpu.dot_dimension_numbers<[1], [0], [0], [1], [0, 0, 1, 1], [], []>} : vector<8x32xf32>, vector<32x8xf32>, vector<8x8xf32> -> vector<8x8xf32>
      %c0_84 = arith.constant 0 : index
      %c0_85 = arith.constant 0 : index
      %c0_86 = arith.constant 0 : index
      %111 = vector.load %arg9[%c0_84, %c0_85, %c0_86] : memref<4x1x8xf32, #tpu.memory_space<vmem>>, vector<1x1x8xf32>
      %112 = vector.shape_cast %111 : vector<1x1x8xf32> to vector<1x8xf32>
      %113 = vector.broadcast %112 : vector<1x8xf32> to vector<8x8xf32>
      %114 = arith.addf %107, %113 : vector<8x8xf32>
      %c0_87 = arith.constant 0 : index
      %c0_88 = arith.constant 0 : index
      %c0_89 = arith.constant 0 : index
      %115 = vector.load %arg12[%c0_87, %c0_88, %c0_89] : memref<4x8x8xf32, #tpu.memory_space<vmem>>, vector<1x8x8xf32>
      %116 = vector.shape_cast %115 : vector<1x8x8xf32> to vector<8x8xf32>
      %117 = vector.shape_cast %114 : vector<8x8xf32> to vector<1x8x8xf32>
      tpu.vector_store %arg12[%c0_87, %c0_88, %c0_89], %117 {strides = array<i32>} : memref<4x8x8xf32, #tpu.memory_space<vmem>>, vector<1x8x8xf32>,
      %c0_90 = arith.constant 0 : index
      %c0_91 = arith.constant 0 : index
      %c0_92 = arith.constant 0 : index
      %118 = vector.load %arg10[%c0_90, %c0_91, %c0_92] : memref<4x1x8xf32, #tpu.memory_space<vmem>>, vector<1x1x8xf32>
      %119 = vector.shape_cast %118 : vector<1x1x8xf32> to vector<1x8xf32>
      %120 = vector.broadcast %119 : vector<1x8xf32> to vector<8x8xf32>
      %121 = arith.addf %110, %120 : vector<8x8xf32>
      %c0_93 = arith.constant 0 : index
      %c0_94 = arith.constant 0 : index
      %c0_95 = arith.constant 0 : index
      %122 = vector.load %arg13[%c0_93, %c0_94, %c0_95] : memref<4x8x8xf32, #tpu.memory_space<vmem>>, vector<1x8x8xf32>
      %123 = vector.shape_cast %122 : vector<1x8x8xf32> to vector<8x8xf32>
      %124 = vector.shape_cast %121 : vector<8x8xf32> to vector<1x8x8xf32>
      tpu.vector_store %arg13[%c0_93, %c0_94, %c0_95], %124 {strides = array<i32>} : memref<4x8x8xf32, #tpu.memory_space<vmem>>, vector<1x8x8xf32>,
      %c1_96 = arith.constant 1 : index
      %c0_97 = arith.constant 0 : index
      %c0_98 = arith.constant 0 : index
      %125 = vector.load %arg6[%c1_96, %c0_97, %c0_98] : memref<4x32x8xf32, #tpu.memory_space<vmem>>, vector<1x32x8xf32>
      %126 = vector.shape_cast %125 : vector<1x32x8xf32> to vector<32x8xf32>
      %cst_99 = arith.constant dense<0.000000e+00> : vector<8x8xf32>
      %127 = tpu.matmul %102, %126, %cst_99 {dimension_numbers = #tpu.dot_dimension_numbers<[1], [0], [0], [1], [0, 0, 1, 1], [], []>} : vector<8x32xf32>, vector<32x8xf32>, vector<8x8xf32> -> vector<8x8xf32>
      %c1_100 = arith.constant 1 : index
      %c0_101 = arith.constant 0 : index
      %c0_102 = arith.constant 0 : index
      %128 = vector.load %arg7[%c1_100, %c0_101, %c0_102] : memref<4x32x8xf32, #tpu.memory_space<vmem>>, vector<1x32x8xf32>
      %129 = vector.shape_cast %128 : vector<1x32x8xf32> to vector<32x8xf32>
      %cst_103 = arith.constant dense<0.000000e+00> : vector<8x8xf32>
      %130 = tpu.matmul %104, %129, %cst_103 {dimension_numbers = #tpu.dot_dimension_numbers<[1], [0], [0], [1], [0, 0, 1, 1], [], []>} : vector<8x32xf32>, vector<32x8xf32>, vector<8x8xf32> -> vector<8x8xf32>
      %c1_104 = arith.constant 1 : index
      %c0_105 = arith.constant 0 : index
      %c0_106 = arith.constant 0 : index
      %131 = vector.load %arg9[%c1_104, %c0_105, %c0_106] : memref<4x1x8xf32, #tpu.memory_space<vmem>>, vector<1x1x8xf32>
      %132 = vector.shape_cast %131 : vector<1x1x8xf32> to vector<1x8xf32>
      %133 = vector.broadcast %132 : vector<1x8xf32> to vector<8x8xf32>
      %134 = arith.addf %127, %133 : vector<8x8xf32>
      %c1_107 = arith.constant 1 : index
      %c0_108 = arith.constant 0 : index
      %c0_109 = arith.constant 0 : index
      %135 = vector.load %arg12[%c1_107, %c0_108, %c0_109] : memref<4x8x8xf32, #tpu.memory_space<vmem>>, vector<1x8x8xf32>
      %136 = vector.shape_cast %135 : vector<1x8x8xf32> to vector<8x8xf32>
      %137 = vector.shape_cast %134 : vector<8x8xf32> to vector<1x8x8xf32>
      tpu.vector_store %arg12[%c1_107, %c0_108, %c0_109], %137 {strides = array<i32>} : memref<4x8x8xf32, #tpu.memory_space<vmem>>, vector<1x8x8xf32>,
      %c1_110 = arith.constant 1 : index
      %c0_111 = arith.constant 0 : index
      %c0_112 = arith.constant 0 : index
      %138 = vector.load %arg10[%c1_110, %c0_111, %c0_112] : memref<4x1x8xf32, #tpu.memory_space<vmem>>, vector<1x1x8xf32>
      %139 = vector.shape_cast %138 : vector<1x1x8xf32> to vector<1x8xf32>
      %140 = vector.broadcast %139 : vector<1x8xf32> to vector<8x8xf32>
      %141 = arith.addf %130, %140 : vector<8x8xf32>
      %c1_113 = arith.constant 1 : index
      %c0_114 = arith.constant 0 : index
      %c0_115 = arith.constant 0 : index
      %142 = vector.load %arg13[%c1_113, %c0_114, %c0_115] : memref<4x8x8xf32, #tpu.memory_space<vmem>>, vector<1x8x8xf32>
      %143 = vector.shape_cast %142 : vector<1x8x8xf32> to vector<8x8xf32>
      %144 = vector.shape_cast %141 : vector<8x8xf32> to vector<1x8x8xf32>
      tpu.vector_store %arg13[%c1_113, %c0_114, %c0_115], %144 {strides = array<i32>} : memref<4x8x8xf32, #tpu.memory_space<vmem>>, vector<1x8x8xf32>,
      %c2_116 = arith.constant 2 : index
      %c0_117 = arith.constant 0 : index
      %c0_118 = arith.constant 0 : index
      %145 = vector.load %arg6[%c2_116, %c0_117, %c0_118] : memref<4x32x8xf32, #tpu.memory_space<vmem>>, vector<1x32x8xf32>
      %146 = vector.shape_cast %145 : vector<1x32x8xf32> to vector<32x8xf32>
      %cst_119 = arith.constant dense<0.000000e+00> : vector<8x8xf32>
      %147 = tpu.matmul %102, %146, %cst_119 {dimension_numbers = #tpu.dot_dimension_numbers<[1], [0], [0], [1], [0, 0, 1, 1], [], []>} : vector<8x32xf32>, vector<32x8xf32>, vector<8x8xf32> -> vector<8x8xf32>
      %c2_120 = arith.constant 2 : index
      %c0_121 = arith.constant 0 : index
      %c0_122 = arith.constant 0 : index
      %148 = vector.load %arg7[%c2_120, %c0_121, %c0_122] : memref<4x32x8xf32, #tpu.memory_space<vmem>>, vector<1x32x8xf32>
      %149 = vector.shape_cast %148 : vector<1x32x8xf32> to vector<32x8xf32>
      %cst_123 = arith.constant dense<0.000000e+00> : vector<8x8xf32>
      %150 = tpu.matmul %104, %149, %cst_123 {dimension_numbers = #tpu.dot_dimension_numbers<[1], [0], [0], [1], [0, 0, 1, 1], [], []>} : vector<8x32xf32>, vector<32x8xf32>, vector<8x8xf32> -> vector<8x8xf32>
      %c2_124 = arith.constant 2 : index
      %c0_125 = arith.constant 0 : index
      %c0_126 = arith.constant 0 : index
      %151 = vector.load %arg9[%c2_124, %c0_125, %c0_126] : memref<4x1x8xf32, #tpu.memory_space<vmem>>, vector<1x1x8xf32>
      %152 = vector.shape_cast %151 : vector<1x1x8xf32> to vector<1x8xf32>
      %153 = vector.broadcast %152 : vector<1x8xf32> to vector<8x8xf32>
      %154 = arith.addf %147, %153 : vector<8x8xf32>
      %c2_127 = arith.constant 2 : index
      %c0_128 = arith.constant 0 : index
      %c0_129 = arith.constant 0 : index
      %155 = vector.load %arg12[%c2_127, %c0_128, %c0_129] : memref<4x8x8xf32, #tpu.memory_space<vmem>>, vector<1x8x8xf32>
      %156 = vector.shape_cast %155 : vector<1x8x8xf32> to vector<8x8xf32>
      %157 = vector.shape_cast %154 : vector<8x8xf32> to vector<1x8x8xf32>
      tpu.vector_store %arg12[%c2_127, %c0_128, %c0_129], %157 {strides = array<i32>} : memref<4x8x8xf32, #tpu.memory_space<vmem>>, vector<1x8x8xf32>,
      %c2_130 = arith.constant 2 : index
      %c0_131 = arith.constant 0 : index
      %c0_132 = arith.constant 0 : index
      %158 = vector.load %arg10[%c2_130, %c0_131, %c0_132] : memref<4x1x8xf32, #tpu.memory_space<vmem>>, vector<1x1x8xf32>
      %159 = vector.shape_cast %158 : vector<1x1x8xf32> to vector<1x8xf32>
      %160 = vector.broadcast %159 : vector<1x8xf32> to vector<8x8xf32>
      %161 = arith.addf %150, %160 : vector<8x8xf32>
      %c2_133 = arith.constant 2 : index
      %c0_134 = arith.constant 0 : index
      %c0_135 = arith.constant 0 : index
      %162 = vector.load %arg13[%c2_133, %c0_134, %c0_135] : memref<4x8x8xf32, #tpu.memory_space<vmem>>, vector<1x8x8xf32>
      %163 = vector.shape_cast %162 : vector<1x8x8xf32> to vector<8x8xf32>
      %164 = vector.shape_cast %161 : vector<8x8xf32> to vector<1x8x8xf32>
      tpu.vector_store %arg13[%c2_133, %c0_134, %c0_135], %164 {strides = array<i32>} : memref<4x8x8xf32, #tpu.memory_space<vmem>>, vector<1x8x8xf32>,
      %c3_136 = arith.constant 3 : index
      %c0_137 = arith.constant 0 : index
      %c0_138 = arith.constant 0 : index
      %165 = vector.load %arg6[%c3_136, %c0_137, %c0_138] : memref<4x32x8xf32, #tpu.memory_space<vmem>>, vector<1x32x8xf32>
      %166 = vector.shape_cast %165 : vector<1x32x8xf32> to vector<32x8xf32>
      %cst_139 = arith.constant dense<0.000000e+00> : vector<8x8xf32>
      %167 = tpu.matmul %102, %166, %cst_139 {dimension_numbers = #tpu.dot_dimension_numbers<[1], [0], [0], [1], [0, 0, 1, 1], [], []>} : vector<8x32xf32>, vector<32x8xf32>, vector<8x8xf32> -> vector<8x8xf32>
      %c3_140 = arith.constant 3 : index
      %c0_141 = arith.constant 0 : index
      %c0_142 = arith.constant 0 : index
      %168 = vector.load %arg7[%c3_140, %c0_141, %c0_142] : memref<4x32x8xf32, #tpu.memory_space<vmem>>, vector<1x32x8xf32>
      %169 = vector.shape_cast %168 : vector<1x32x8xf32> to vector<32x8xf32>
      %cst_143 = arith.constant dense<0.000000e+00> : vector<8x8xf32>
      %170 = tpu.matmul %104, %169, %cst_143 {dimension_numbers = #tpu.dot_dimension_numbers<[1], [0], [0], [1], [0, 0, 1, 1], [], []>} : vector<8x32xf32>, vector<32x8xf32>, vector<8x8xf32> -> vector<8x8xf32>
      %c3_144 = arith.constant 3 : index
      %c0_145 = arith.constant 0 : index
      %c0_146 = arith.constant 0 : index
      %171 = vector.load %arg9[%c3_144, %c0_145, %c0_146] : memref<4x1x8xf32, #tpu.memory_space<vmem>>, vector<1x1x8xf32>
      %172 = vector.shape_cast %171 : vector<1x1x8xf32> to vector<1x8xf32>
      %173 = vector.broadcast %172 : vector<1x8xf32> to vector<8x8xf32>
      %174 = arith.addf %167, %173 : vector<8x8xf32>
      %c3_147 = arith.constant 3 : index
      %c0_148 = arith.constant 0 : index
      %c0_149 = arith.constant 0 : index
      %175 = vector.load %arg12[%c3_147, %c0_148, %c0_149] : memref<4x8x8xf32, #tpu.memory_space<vmem>>, vector<1x8x8xf32>
      %176 = vector.shape_cast %175 : vector<1x8x8xf32> to vector<8x8xf32>
      %177 = vector.shape_cast %174 : vector<8x8xf32> to vector<1x8x8xf32>
      tpu.vector_store %arg12[%c3_147, %c0_148, %c0_149], %177 {strides = array<i32>} : memref<4x8x8xf32, #tpu.memory_space<vmem>>, vector<1x8x8xf32>,
      %c3_150 = arith.constant 3 : index
      %c0_151 = arith.constant 0 : index
      %c0_152 = arith.constant 0 : index
      %178 = vector.load %arg10[%c3_150, %c0_151, %c0_152] : memref<4x1x8xf32, #tpu.memory_space<vmem>>, vector<1x1x8xf32>
      %179 = vector.shape_cast %178 : vector<1x1x8xf32> to vector<1x8xf32>
      %180 = vector.broadcast %179 : vector<1x8xf32> to vector<8x8xf32>
      %181 = arith.addf %170, %180 : vector<8x8xf32>
      %c3_153 = arith.constant 3 : index
      %c0_154 = arith.constant 0 : index
      %c0_155 = arith.constant 0 : index
      %182 = vector.load %arg13[%c3_153, %c0_154, %c0_155] : memref<4x8x8xf32, #tpu.memory_space<vmem>>, vector<1x8x8xf32>
      %183 = vector.shape_cast %182 : vector<1x8x8xf32> to vector<8x8xf32>
      %184 = vector.shape_cast %181 : vector<8x8xf32> to vector<1x8x8xf32>
      tpu.vector_store %arg13[%c3_153, %c0_154, %c0_155], %184 {strides = array<i32>} : memref<4x8x8xf32, #tpu.memory_space<vmem>>, vector<1x8x8xf32>,
    } else {
    }
    %c0 = arith.constant 0 : index
    %c0_1 = arith.constant 0 : index
    %c0_2 = arith.constant 0 : index
    %3 = vector.load %arg2[%c0, %c0_1, %c0_2] : memref<1x8x32xf32, #tpu.memory_space<vmem>>, vector<1x8x32xf32>
    %4 = vector.shape_cast %3 : vector<1x8x32xf32> to vector<8x32xf32>
    %c0_3 = arith.constant 0 : index
    %c0_4 = arith.constant 0 : index
    %c0_5 = arith.constant 0 : index
    %5 = vector.load %arg5[%c0_3, %c0_4, %c0_5] : memref<4x32x8xf32, #tpu.memory_space<vmem>>, vector<1x32x8xf32>
    %6 = vector.shape_cast %5 : vector<1x32x8xf32> to vector<32x8xf32>
    %cst = arith.constant dense<0.000000e+00> : vector<8x8xf32>
    %7 = tpu.matmul %4, %6, %cst {dimension_numbers = #tpu.dot_dimension_numbers<[1], [0], [0], [1], [0, 0, 1, 1], [], []>} : vector<8x32xf32>, vector<32x8xf32>, vector<8x8xf32> -> vector<8x8xf32>
    %c0_6 = arith.constant 0 : index
    %c0_7 = arith.constant 0 : index
    %c0_8 = arith.constant 0 : index
    %8 = vector.load %arg8[%c0_6, %c0_7, %c0_8] : memref<4x1x8xf32, #tpu.memory_space<vmem>>, vector<1x1x8xf32>
    %9 = vector.shape_cast %8 : vector<1x1x8xf32> to vector<1x8xf32>
    %10 = vector.broadcast %9 : vector<1x8xf32> to vector<8x8xf32>
    %11 = arith.addf %7, %10 : vector<8x8xf32>
    %c0_9 = arith.constant 0 : index
    %c0_10 = arith.constant 0 : index
    %c0_11 = arith.constant 0 : index
    %12 = vector.load %arg12[%c0_9, %c0_10, %c0_11] : memref<4x8x8xf32, #tpu.memory_space<vmem>>, vector<1x8x8xf32>
    %13 = vector.shape_cast %12 : vector<1x8x8xf32> to vector<8x8xf32>
    %c0_12 = arith.constant 0 : index
    %c0_13 = arith.constant 0 : index
    %c0_14 = arith.constant 0 : index
    %14 = vector.load %arg13[%c0_12, %c0_13, %c0_14] : memref<4x8x8xf32, #tpu.memory_space<vmem>>, vector<1x8x8xf32>
    %15 = vector.shape_cast %14 : vector<1x8x8xf32> to vector<8x8xf32>
    %cst_15 = arith.constant dense<0.000000e+00> : vector<8x8xf32>
    %16 = tpu.matmul %11, %13, %cst_15 {dimension_numbers = #tpu.dot_dimension_numbers<[1], [1], [0], [0], [0, 0, 1, 0], [], []>} : vector<8x8xf32>, vector<8x8xf32>, vector<8x8xf32> -> vector<8x8xf32>
    %cst_16 = arith.constant dense<0xFF800000> : vector<8xf32>
    %17 = vector.multi_reduction <maximumf>, %16, %cst_16 [1] : vector<8x8xf32> to vector<8xf32>
    %18 = vector.shape_cast %17 : vector<8xf32> to vector<8x1xf32>
    %19 = vector.broadcast %18 : vector<8x1xf32> to vector<8x8xf32>
    %20 = arith.subf %16, %19 : vector<8x8xf32>
    %21 = math.exp %20 : vector<8x8xf32>
    %cst_17 = arith.constant dense<0.000000e+00> : vector<8xf32>
    %22 = vector.multi_reduction <add>, %21, %cst_17 [1] : vector<8x8xf32> to vector<8xf32>
    %23 = vector.shape_cast %22 : vector<8xf32> to vector<8x1xf32>
    %cst_18 = arith.constant dense<0.000000e+00> : vector<8x8xf32>
    %24 = tpu.matmul %21, %15, %cst_18 {dimension_numbers = #tpu.dot_dimension_numbers<[1], [0], [0], [1], [0, 0, 1, 1], [], []>} : vector<8x8xf32>, vector<8x8xf32>, vector<8x8xf32> -> vector<8x8xf32>
    %25 = tpu.reciprocal %23 : vector<8x1xf32> -> vector<8x1xf32>
    %26 = vector.broadcast %25 : vector<8x1xf32> to vector<8x8xf32>
    %27 = arith.mulf %24, %26 : vector<8x8xf32>
    %c1 = arith.constant 1 : index
    %c0_19 = arith.constant 0 : index
    %c0_20 = arith.constant 0 : index
    %28 = vector.load %arg5[%c1, %c0_19, %c0_20] : memref<4x32x8xf32, #tpu.memory_space<vmem>>, vector<1x32x8xf32>
    %29 = vector.shape_cast %28 : vector<1x32x8xf32> to vector<32x8xf32>
    %cst_21 = arith.constant dense<0.000000e+00> : vector<8x8xf32>
    %30 = tpu.matmul %4, %29, %cst_21 {dimension_numbers = #tpu.dot_dimension_numbers<[1], [0], [0], [1], [0, 0, 1, 1], [], []>} : vector<8x32xf32>, vector<32x8xf32>, vector<8x8xf32> -> vector<8x8xf32>
    %c1_22 = arith.constant 1 : index
    %c0_23 = arith.constant 0 : index
    %c0_24 = arith.constant 0 : index
    %31 = vector.load %arg8[%c1_22, %c0_23, %c0_24] : memref<4x1x8xf32, #tpu.memory_space<vmem>>, vector<1x1x8xf32>
    %32 = vector.shape_cast %31 : vector<1x1x8xf32> to vector<1x8xf32>
    %33 = vector.broadcast %32 : vector<1x8xf32> to vector<8x8xf32>
    %34 = arith.addf %30, %33 : vector<8x8xf32>
    %c1_25 = arith.constant 1 : index
    %c0_26 = arith.constant 0 : index
    %c0_27 = arith.constant 0 : index
    %35 = vector.load %arg12[%c1_25, %c0_26, %c0_27] : memref<4x8x8xf32, #tpu.memory_space<vmem>>, vector<1x8x8xf32>
    %36 = vector.shape_cast %35 : vector<1x8x8xf32> to vector<8x8xf32>
    %c1_28 = arith.constant 1 : index
    %c0_29 = arith.constant 0 : index
    %c0_30 = arith.constant 0 : index
    %37 = vector.load %arg13[%c1_28, %c0_29, %c0_30] : memref<4x8x8xf32, #tpu.memory_space<vmem>>, vector<1x8x8xf32>
    %38 = vector.shape_cast %37 : vector<1x8x8xf32> to vector<8x8xf32>
    %cst_31 = arith.constant dense<0.000000e+00> : vector<8x8xf32>
    %39 = tpu.matmul %34, %36, %cst_31 {dimension_numbers = #tpu.dot_dimension_numbers<[1], [1], [0], [0], [0, 0, 1, 0], [], []>} : vector<8x8xf32>, vector<8x8xf32>, vector<8x8xf32> -> vector<8x8xf32>
    %cst_32 = arith.constant dense<0xFF800000> : vector<8xf32>
    %40 = vector.multi_reduction <maximumf>, %39, %cst_32 [1] : vector<8x8xf32> to vector<8xf32>
    %41 = vector.shape_cast %40 : vector<8xf32> to vector<8x1xf32>
    %42 = vector.broadcast %41 : vector<8x1xf32> to vector<8x8xf32>
    %43 = arith.subf %39, %42 : vector<8x8xf32>
    %44 = math.exp %43 : vector<8x8xf32>
    %cst_33 = arith.constant dense<0.000000e+00> : vector<8xf32>
    %45 = vector.multi_reduction <add>, %44, %cst_33 [1] : vector<8x8xf32> to vector<8xf32>
    %46 = vector.shape_cast %45 : vector<8xf32> to vector<8x1xf32>
    %cst_34 = arith.constant dense<0.000000e+00> : vector<8x8xf32>
    %47 = tpu.matmul %44, %38, %cst_34 {dimension_numbers = #tpu.dot_dimension_numbers<[1], [0], [0], [1], [0, 0, 1, 1], [], []>} : vector<8x8xf32>, vector<8x8xf32>, vector<8x8xf32> -> vector<8x8xf32>
    %48 = tpu.reciprocal %46 : vector<8x1xf32> -> vector<8x1xf32>
    %49 = vector.broadcast %48 : vector<8x1xf32> to vector<8x8xf32>
    %50 = arith.mulf %47, %49 : vector<8x8xf32>
    %c2 = arith.constant 2 : index
    %c0_35 = arith.constant 0 : index
    %c0_36 = arith.constant 0 : index
    %51 = vector.load %arg5[%c2, %c0_35, %c0_36] : memref<4x32x8xf32, #tpu.memory_space<vmem>>, vector<1x32x8xf32>
    %52 = vector.shape_cast %51 : vector<1x32x8xf32> to vector<32x8xf32>
    %cst_37 = arith.constant dense<0.000000e+00> : vector<8x8xf32>
    %53 = tpu.matmul %4, %52, %cst_37 {dimension_numbers = #tpu.dot_dimension_numbers<[1], [0], [0], [1], [0, 0, 1, 1], [], []>} : vector<8x32xf32>, vector<32x8xf32>, vector<8x8xf32> -> vector<8x8xf32>
    %c2_38 = arith.constant 2 : index
    %c0_39 = arith.constant 0 : index
    %c0_40 = arith.constant 0 : index
    %54 = vector.load %arg8[%c2_38, %c0_39, %c0_40] : memref<4x1x8xf32, #tpu.memory_space<vmem>>, vector<1x1x8xf32>
    %55 = vector.shape_cast %54 : vector<1x1x8xf32> to vector<1x8xf32>
    %56 = vector.broadcast %55 : vector<1x8xf32> to vector<8x8xf32>
    %57 = arith.addf %53, %56 : vector<8x8xf32>
    %c2_41 = arith.constant 2 : index
    %c0_42 = arith.constant 0 : index
    %c0_43 = arith.constant 0 : index
    %58 = vector.load %arg12[%c2_41, %c0_42, %c0_43] : memref<4x8x8xf32, #tpu.memory_space<vmem>>, vector<1x8x8xf32>
    %59 = vector.shape_cast %58 : vector<1x8x8xf32> to vector<8x8xf32>
    %c2_44 = arith.constant 2 : index
    %c0_45 = arith.constant 0 : index
    %c0_46 = arith.constant 0 : index
    %60 = vector.load %arg13[%c2_44, %c0_45, %c0_46] : memref<4x8x8xf32, #tpu.memory_space<vmem>>, vector<1x8x8xf32>
    %61 = vector.shape_cast %60 : vector<1x8x8xf32> to vector<8x8xf32>
    %cst_47 = arith.constant dense<0.000000e+00> : vector<8x8xf32>
    %62 = tpu.matmul %57, %59, %cst_47 {dimension_numbers = #tpu.dot_dimension_numbers<[1], [1], [0], [0], [0, 0, 1, 0], [], []>} : vector<8x8xf32>, vector<8x8xf32>, vector<8x8xf32> -> vector<8x8xf32>
    %cst_48 = arith.constant dense<0xFF800000> : vector<8xf32>
    %63 = vector.multi_reduction <maximumf>, %62, %cst_48 [1] : vector<8x8xf32> to vector<8xf32>
    %64 = vector.shape_cast %63 : vector<8xf32> to vector<8x1xf32>
    %65 = vector.broadcast %64 : vector<8x1xf32> to vector<8x8xf32>
    %66 = arith.subf %62, %65 : vector<8x8xf32>
    %67 = math.exp %66 : vector<8x8xf32>
    %cst_49 = arith.constant dense<0.000000e+00> : vector<8xf32>
    %68 = vector.multi_reduction <add>, %67, %cst_49 [1] : vector<8x8xf32> to vector<8xf32>
    %69 = vector.shape_cast %68 : vector<8xf32> to vector<8x1xf32>
    %cst_50 = arith.constant dense<0.000000e+00> : vector<8x8xf32>
    %70 = tpu.matmul %67, %61, %cst_50 {dimension_numbers = #tpu.dot_dimension_numbers<[1], [0], [0], [1], [0, 0, 1, 1], [], []>} : vector<8x8xf32>, vector<8x8xf32>, vector<8x8xf32> -> vector<8x8xf32>
    %71 = tpu.reciprocal %69 : vector<8x1xf32> -> vector<8x1xf32>
    %72 = vector.broadcast %71 : vector<8x1xf32> to vector<8x8xf32>
    %73 = arith.mulf %70, %72 : vector<8x8xf32>
    %c3 = arith.constant 3 : index
    %c0_51 = arith.constant 0 : index
    %c0_52 = arith.constant 0 : index
    %74 = vector.load %arg5[%c3, %c0_51, %c0_52] : memref<4x32x8xf32, #tpu.memory_space<vmem>>, vector<1x32x8xf32>
    %75 = vector.shape_cast %74 : vector<1x32x8xf32> to vector<32x8xf32>
    %cst_53 = arith.constant dense<0.000000e+00> : vector<8x8xf32>
    %76 = tpu.matmul %4, %75, %cst_53 {dimension_numbers = #tpu.dot_dimension_numbers<[1], [0], [0], [1], [0, 0, 1, 1], [], []>} : vector<8x32xf32>, vector<32x8xf32>, vector<8x8xf32> -> vector<8x8xf32>
    %c3_54 = arith.constant 3 : index
    %c0_55 = arith.constant 0 : index
    %c0_56 = arith.constant 0 : index
    %77 = vector.load %arg8[%c3_54, %c0_55, %c0_56] : memref<4x1x8xf32, #tpu.memory_space<vmem>>, vector<1x1x8xf32>
    %78 = vector.shape_cast %77 : vector<1x1x8xf32> to vector<1x8xf32>
    %79 = vector.broadcast %78 : vector<1x8xf32> to vector<8x8xf32>
    %80 = arith.addf %76, %79 : vector<8x8xf32>
    %c3_57 = arith.constant 3 : index
    %c0_58 = arith.constant 0 : index
    %c0_59 = arith.constant 0 : index
    %81 = vector.load %arg12[%c3_57, %c0_58, %c0_59] : memref<4x8x8xf32, #tpu.memory_space<vmem>>, vector<1x8x8xf32>
    %82 = vector.shape_cast %81 : vector<1x8x8xf32> to vector<8x8xf32>
    %c3_60 = arith.constant 3 : index
    %c0_61 = arith.constant 0 : index
    %c0_62 = arith.constant 0 : index
    %83 = vector.load %arg13[%c3_60, %c0_61, %c0_62] : memref<4x8x8xf32, #tpu.memory_space<vmem>>, vector<1x8x8xf32>
    %84 = vector.shape_cast %83 : vector<1x8x8xf32> to vector<8x8xf32>
    %cst_63 = arith.constant dense<0.000000e+00> : vector<8x8xf32>
    %85 = tpu.matmul %80, %82, %cst_63 {dimension_numbers = #tpu.dot_dimension_numbers<[1], [1], [0], [0], [0, 0, 1, 0], [], []>} : vector<8x8xf32>, vector<8x8xf32>, vector<8x8xf32> -> vector<8x8xf32>
    %cst_64 = arith.constant dense<0xFF800000> : vector<8xf32>
    %86 = vector.multi_reduction <maximumf>, %85, %cst_64 [1] : vector<8x8xf32> to vector<8xf32>
    %87 = vector.shape_cast %86 : vector<8xf32> to vector<8x1xf32>
    %88 = vector.broadcast %87 : vector<8x1xf32> to vector<8x8xf32>
    %89 = arith.subf %85, %88 : vector<8x8xf32>
    %90 = math.exp %89 : vector<8x8xf32>
    %cst_65 = arith.constant dense<0.000000e+00> : vector<8xf32>
    %91 = vector.multi_reduction <add>, %90, %cst_65 [1] : vector<8x8xf32> to vector<8xf32>
    %92 = vector.shape_cast %91 : vector<8xf32> to vector<8x1xf32>
    %cst_66 = arith.constant dense<0.000000e+00> : vector<8x8xf32>
    %93 = tpu.matmul %90, %84, %cst_66 {dimension_numbers = #tpu.dot_dimension_numbers<[1], [0], [0], [1], [0, 0, 1, 1], [], []>} : vector<8x8xf32>, vector<8x8xf32>, vector<8x8xf32> -> vector<8x8xf32>
    %94 = tpu.reciprocal %92 : vector<8x1xf32> -> vector<8x1xf32>
    %95 = vector.broadcast %94 : vector<8x1xf32> to vector<8x8xf32>
    %96 = arith.mulf %93, %95 : vector<8x8xf32>
    %97 = tpu.concatenate %27, %50, %73, %96 in 1 : vector<8x8xf32>, vector<8x8xf32>, vector<8x8xf32>, vector<8x8xf32> -> vector<8x32xf32>
    %c0_67 = arith.constant 0 : index
    %c0_68 = arith.constant 0 : index
    %c0_69 = arith.constant 0 : index
    %98 = vector.load %arg11[%c0_67, %c0_68, %c0_69] : memref<1x8x32xf32, #tpu.memory_space<vmem>>, vector<1x8x32xf32>
    %99 = vector.shape_cast %98 : vector<1x8x32xf32> to vector<8x32xf32>
    %100 = vector.shape_cast %97 : vector<8x32xf32> to vector<1x8x32xf32>
    tpu.vector_store %arg11[%c0_67, %c0_68, %c0_69], %100 {strides = array<i32>} : memref<1x8x32xf32, #tpu.memory_space<vmem>>, vector<1x8x32xf32>,
    return
  }
  func.func @transform_0(%arg0: i32, %arg1: i32) -> (i32, i32, i32) {
    %c0_i32 = arith.constant 0 : i32
    %c0_i32_0 = arith.constant 0 : i32
    return %arg0, %arg1, %c0_i32 : i32, i32, i32
  }
  func.func @transform_1(%arg0: i32, %arg1: i32) -> (i32, i32, i32) {
    %c0_i32 = arith.constant 0 : i32
    %c0_i32_0 = arith.constant 0 : i32
    %c0_i32_1 = arith.constant 0 : i32
    return %arg0, %c0_i32, %c0_i32_0 : i32, i32, i32
  }
  func.func @transform_2(%arg0: i32, %arg1: i32) -> (i32, i32, i32) {
    %c0_i32 = arith.constant 0 : i32
    %c0_i32_0 = arith.constant 0 : i32
    %c0_i32_1 = arith.constant 0 : i32
    return %arg0, %c0_i32, %c0_i32_0 : i32, i32, i32
  }
  func.func @transform_3(%arg0: i32, %arg1: i32) -> (i32, i32, i32) {
    %c0_i32 = arith.constant 0 : i32
    %c0_i32_0 = arith.constant 0 : i32
    %c0_i32_1 = arith.constant 0 : i32
    %c0_i32_2 = arith.constant 0 : i32
    return %c0_i32, %c0_i32_0, %c0_i32_1 : i32, i32, i32
  }
  func.func @transform_4(%arg0: i32, %arg1: i32) -> (i32, i32, i32) {
    %c0_i32 = arith.constant 0 : i32
    %c0_i32_0 = arith.constant 0 : i32
    %c0_i32_1 = arith.constant 0 : i32
    %c0_i32_2 = arith.constant 0 : i32
    return %c0_i32, %c0_i32_0, %c0_i32_1 : i32, i32, i32
  }
  func.func @transform_5(%arg0: i32, %arg1: i32) -> (i32, i32, i32) {
    %c0_i32 = arith.constant 0 : i32
    %c0_i32_0 = arith.constant 0 : i32
    %c0_i32_1 = arith.constant 0 : i32
    %c0_i32_2 = arith.constant 0 : i32
    return %c0_i32, %c0_i32_0, %c0_i32_1 : i32, i32, i32
  }
  func.func @transform_6(%arg0: i32, %arg1: i32) -> (i32, i32, i32) {
    %c0_i32 = arith.constant 0 : i32
    %c0_i32_0 = arith.constant 0 : i32
    %c0_i32_1 = arith.constant 0 : i32
    %c0_i32_2 = arith.constant 0 : i32
    return %c0_i32, %c0_i32_0, %c0_i32_1 : i32, i32, i32
  }
  func.func @transform_7(%arg0: i32, %arg1: i32) -> (i32, i32, i32) {
    %c0_i32 = arith.constant 0 : i32
    %c0_i32_0 = arith.constant 0 : i32
    %c0_i32_1 = arith.constant 0 : i32
    %c0_i32_2 = arith.constant 0 : i32
    return %c0_i32, %c0_i32_0, %c0_i32_1 : i32, i32, i32
  }
  func.func @transform_8(%arg0: i32, %arg1: i32) -> (i32, i32, i32) {
    %c0_i32 = arith.constant 0 : i32
    %c0_i32_0 = arith.constant 0 : i32
    %c0_i32_1 = arith.constant 0 : i32
    %c0_i32_2 = arith.constant 0 : i32
    return %c0_i32, %c0_i32_0, %c0_i32_1 : i32, i32, i32
  }
  func.func @transform_9(%arg0: i32, %arg1: i32) -> (i32, i32, i32) {
    %c0_i32 = arith.constant 0 : i32
    %c0_i32_0 = arith.constant 0 : i32
    return %arg0, %arg1, %c0_i32 : i32, i32, i32
  }
}

module attributes {stable_mosaic.version = 11 : i64} {
  func.func @_mhca_kernel(%arg0: i32, %arg1: i32, %arg2: memref<1x8x32xf32, #tpu.memory_space<vmem>>, %arg3: memref<1x8x32xf32, #tpu.memory_space<vmem>>, %arg4: memref<1x8x32xf32, #tpu.memory_space<vmem>>, %arg5: memref<4x32x8xf32, #tpu.memory_space<vmem>>, %arg6: memref<4x32x8xf32, #tpu.memory_space<vmem>>, %arg7: memref<4x32x8xf32, #tpu.memory_space<vmem>>, %arg8: memref<4x1x8xf32, #tpu.memory_space<vmem>>, %arg9: memref<4x1x8xf32, #tpu.memory_space<vmem>>, %arg10: memref<4x1x8xf32, #tpu.memory_space<vmem>>, %arg11: memref<1x8x32xf32, #tpu.memory_space<vmem>>, %arg12: memref<4x8x8xf32, #tpu.memory_space<vmem>>, %arg13: memref<4x8x8xf32, #tpu.memory_space<vmem>>) attributes {dimension_semantics = [#tpu.dimension_semantics<parallel>, #tpu.dimension_semantics<arbitrary>], iteration_bounds = array<i64: 2, 1>, scalar_prefetch = 0 : i64, scratch_operands = 2 : i64, tpu.core_type = #tpu.core_type<tc>, window_params = [{transform_indices = @transform_0, window_bounds = array<i64: 1, 8, 32>}, {transform_indices = @transform_1, window_bounds = array<i64: 1, 8, 32>}, {transform_indices = @transform_2, window_bounds = array<i64: 1, 8, 32>}, {pipeline_mode = #tpu.pipeline_mode<synchronous>, transform_indices = @transform_3, window_bounds = array<i64: 4, 32, 8>}, {pipeline_mode = #tpu.pipeline_mode<synchronous>, transform_indices = @transform_4, window_bounds = array<i64: 4, 32, 8>}, {pipeline_mode = #tpu.pipeline_mode<synchronous>, transform_indices = @transform_5, window_bounds = array<i64: 4, 32, 8>}, {pipeline_mode = #tpu.pipeline_mode<synchronous>, transform_indices = @transform_6, window_bounds = array<i64: 4, 1, 8>}, {pipeline_mode = #tpu.pipeline_mode<synchronous>, transform_indices = @transform_7, window_bounds = array<i64: 4, 1, 8>}, {pipeline_mode = #tpu.pipeline_mode<synchronous>, transform_indices = @transform_8, window_bounds = array<i64: 4, 1, 8>}, {transform_indices = @transform_9, window_bounds = array<i64: 1, 8, 32>}]} {
    %c0_i32 = arith.constant 0 : i32
    %0 = arith.cmpi eq, %arg1, %c0_i32 : i32
    %1 = arith.extui %0 : i1 to i32
    %c0_i32_0 = arith.constant 0 : i32
    %2 = arith.cmpi ne, %1, %c0_i32_0 : i32
    scf.if %2 {
      %c0_70 = arith.constant 0 : index
      %c0_71 = arith.constant 0 : index
      %c0_72 = arith.constant 0 : index
      %101 = vector.load %arg3[%c0_70, %c0_71, %c0_72] : memref<1x8x32xf32, #tpu.memory_space<vmem>>, vector<1x8x32xf32>
      %102 = vector.shape_cast %101 : vector<1x8x32xf32> to vector<8x32xf32>
      %c0_73 = arith.constant 0 : index
      %c0_74 = arith.constant 0 : index
      %c0_75 = arith.constant 0 : index
      %103 = vector.load %arg4[%c0_73, %c0_74, %c0_75] : memref<1x8x32xf32, #tpu.memory_space<vmem>>, vector<1x8x32xf32>
      %104 = vector.shape_cast %103 : vector<1x8x32xf32> to vector<8x32xf32>
      %c0_76 = arith.constant 0 : index
      %c0_77 = arith.constant 0 : index
      %c0_78 = arith.constant 0 : index
      %105 = vector.load %arg6[%c0_76, %c0_77, %c0_78] : memref<4x32x8xf32, #tpu.memory_space<vmem>>, vector<1x32x8xf32>
      %106 = vector.shape_cast %105 : vector<1x32x8xf32> to vector<32x8xf32>
      %cst_79 = arith.constant dense<0.000000e+00> : vector<8x8xf32>
      %107 = tpu.matmul %102, %106, %cst_79 {dimension_numbers = #tpu.dot_dimension_numbers<[1], [0], [0], [1], [0, 0, 1, 1], [], []>} : vector<8x32xf32>, vector<32x8xf32>, vector<8x8xf32> -> vector<8x8xf32>
      %c0_80 = arith.constant 0 : index
      %c0_81 = arith.constant 0 : index
      %c0_82 = arith.constant 0 : index
      %108 = vector.load %arg7[%c0_80, %c0_81, %c0_82] : memref<4x32x8xf32, #tpu.memory_space<vmem>>, vector<1x32x8xf32>
      %109 = vector.shape_cast %108 : vector<1x32x8xf32> to vector<32x8xf32>
      %cst_83 = arith.constant dense<0.000000e+00> : vector<8x8xf32>
      %110 = tpu.matmul %104, %109, %cst_83 {dimension_numbers = #tpu.dot_dimension_numbers<[1], [0], [0], [1], [0, 0, 1, 1], [], []>} : vector<8x32xf32>, vector<32x8xf32>, vector<8x8xf32> -> vector<8x8xf32>
      %c0_84 = arith.constant 0 : index
      %c0_85 = arith.constant 0 : index
      %c0_86 = arith.constant 0 : index
      %111 = vector.load %arg9[%c0_84, %c0_85, %c0_86] : memref<4x1x8xf32, #tpu.memory_space<vmem>>, vector<1x1x8xf32>
      %112 = vector.shape_cast %111 : vector<1x1x8xf32> to vector<1x8xf32>
      %113 = vector.broadcast %112 : vector<1x8xf32> to vector<8x8xf32>
      %114 = arith.addf %107, %113 : vector<8x8xf32>
      %c0_87 = arith.constant 0 : index
      %c0_88 = arith.constant 0 : index
      %c0_89 = arith.constant 0 : index
      %115 = vector.load %arg12[%c0_87, %c0_88, %c0_89] : memref<4x8x8xf32, #tpu.memory_space<vmem>>, vector<1x8x8xf32>
      %116 = vector.shape_cast %115 : vector<1x8x8xf32> to vector<8x8xf32>
      %117 = vector.shape_cast %114 : vector<8x8xf32> to vector<1x8x8xf32>
      tpu.vector_store %arg12[%c0_87, %c0_88, %c0_89], %117 {strides = array<i32>} : memref<4x8x8xf32, #tpu.memory_space<vmem>>, vector<1x8x8xf32>,
      %c0_90 = arith.constant 0 : index
      %c0_91 = arith.constant 0 : index
      %c0_92 = arith.constant 0 : index
      %118 = vector.load %arg10[%c0_90, %c0_91, %c0_92] : memref<4x1x8xf32, #tpu.memory_space<vmem>>, vector<1x1x8xf32>
      %119 = vector.shape_cast %118 : vector<1x1x8xf32> to vector<1x8xf32>
      %120 = vector.broadcast %119 : vector<1x8xf32> to vector<8x8xf32>
      %121 = arith.addf %110, %120 : vector<8x8xf32>
      %c0_93 = arith.constant 0 : index
      %c0_94 = arith.constant 0 : index
      %c0_95 = arith.constant 0 : index
      %122 = vector.load %arg13[%c0_93, %c0_94, %c0_95] : memref<4x8x8xf32, #tpu.memory_space<vmem>>, vector<1x8x8xf32>
      %123 = vector.shape_cast %122 : vector<1x8x8xf32> to vector<8x8xf32>
      %124 = vector.shape_cast %121 : vector<8x8xf32> to vector<1x8x8xf32>
      tpu.vector_store %arg13[%c0_93, %c0_94, %c0_95], %124 {strides = array<i32>} : memref<4x8x8xf32, #tpu.memory_space<vmem>>, vector<1x8x8xf32>,
      %c1_96 = arith.constant 1 : index
      %c0_97 = arith.constant 0 : index
      %c0_98 = arith.constant 0 : index
      %125 = vector.load %arg6[%c1_96, %c0_97, %c0_98] : memref<4x32x8xf32, #tpu.memory_space<vmem>>, vector<1x32x8xf32>
      %126 = vector.shape_cast %125 : vector<1x32x8xf32> to vector<32x8xf32>
      %cst_99 = arith.constant dense<0.000000e+00> : vector<8x8xf32>
      %127 = tpu.matmul %102, %126, %cst_99 {dimension_numbers = #tpu.dot_dimension_numbers<[1], [0], [0], [1], [0, 0, 1, 1], [], []>} : vector<8x32xf32>, vector<32x8xf32>, vector<8x8xf32> -> vector<8x8xf32>
      %c1_100 = arith.constant 1 : index
      %c0_101 = arith.constant 0 : index
      %c0_102 = arith.constant 0 : index
      %128 = vector.load %arg7[%c1_100, %c0_101, %c0_102] : memref<4x32x8xf32, #tpu.memory_space<vmem>>, vector<1x32x8xf32>
      %129 = vector.shape_cast %128 : vector<1x32x8xf32> to vector<32x8xf32>
      %cst_103 = arith.constant dense<0.000000e+00> : vector<8x8xf32>
      %130 = tpu.matmul %104, %129, %cst_103 {dimension_numbers = #tpu.dot_dimension_numbers<[1], [0], [0], [1], [0, 0, 1, 1], [], []>} : vector<8x32xf32>, vector<32x8xf32>, vector<8x8xf32> -> vector<8x8xf32>
      %c1_104 = arith.constant 1 : index
      %c0_105 = arith.constant 0 : index
      %c0_106 = arith.constant 0 : index
      %131 = vector.load %arg9[%c1_104, %c0_105, %c0_106] : memref<4x1x8xf32, #tpu.memory_space<vmem>>, vector<1x1x8xf32>
      %132 = vector.shape_cast %131 : vector<1x1x8xf32> to vector<1x8xf32>
      %133 = vector.broadcast %132 : vector<1x8xf32> to vector<8x8xf32>
      %134 = arith.addf %127, %133 : vector<8x8xf32>
      %c1_107 = arith.constant 1 : index
      %c0_108 = arith.constant 0 : index
      %c0_109 = arith.constant 0 : index
      %135 = vector.load %arg12[%c1_107, %c0_108, %c0_109] : memref<4x8x8xf32, #tpu.memory_space<vmem>>, vector<1x8x8xf32>
      %136 = vector.shape_cast %135 : vector<1x8x8xf32> to vector<8x8xf32>
      %137 = vector.shape_cast %134 : vector<8x8xf32> to vector<1x8x8xf32>
      tpu.vector_store %arg12[%c1_107, %c0_108, %c0_109], %137 {strides = array<i32>} : memref<4x8x8xf32, #tpu.memory_space<vmem>>, vector<1x8x8xf32>,
      %c1_110 = arith.constant 1 : index
      %c0_111 = arith.constant 0 : index
      %c0_112 = arith.constant 0 : index
      %138 = vector.load %arg10[%c1_110, %c0_111, %c0_112] : memref<4x1x8xf32, #tpu.memory_space<vmem>>, vector<1x1x8xf32>
      %139 = vector.shape_cast %138 : vector<1x1x8xf32> to vector<1x8xf32>
      %140 = vector.broadcast %139 : vector<1x8xf32> to vector<8x8xf32>
      %141 = arith.addf %130, %140 : vector<8x8xf32>
      %c1_113 = arith.constant 1 : index
      %c0_114 = arith.constant 0 : index
      %c0_115 = arith.constant 0 : index
      %142 = vector.load %arg13[%c1_113, %c0_114, %c0_115] : memref<4x8x8xf32, #tpu.memory_space<vmem>>, vector<1x8x8xf32>
      %143 = vector.shape_cast %142 : vector<1x8x8xf32> to vector<8x8xf32>
      %144 = vector.shape_cast %141 : vector<8x8xf32> to vector<1x8x8xf32>
      tpu.vector_store %arg13[%c1_113, %c0_114, %c0_115], %144 {strides = array<i32>} : memref<4x8x8xf32, #tpu.memory_space<vmem>>, vector<1x8x8xf32>,
      %c2_116 = arith.constant 2 : index
      %c0_117 = arith.constant 0 : index
      %c0_118 = arith.constant 0 : index
      %145 = vector.load %arg6[%c2_116, %c0_117, %c0_118] : memref<4x32x8xf32, #tpu.memory_space<vmem>>, vector<1x32x8xf32>
      %146 = vector.shape_cast %145 : vector<1x32x8xf32> to vector<32x8xf32>
      %cst_119 = arith.constant dense<0.000000e+00> : vector<8x8xf32>
      %147 = tpu.matmul %102, %146, %cst_119 {dimension_numbers = #tpu.dot_dimension_numbers<[1], [0], [0], [1], [0, 0, 1, 1], [], []>} : vector<8x32xf32>, vector<32x8xf32>, vector<8x8xf32> -> vector<8x8xf32>
      %c2_120 = arith.constant 2 : index
      %c0_121 = arith.constant 0 : index
      %c0_122 = arith.constant 0 : index
      %148 = vector.load %arg7[%c2_120, %c0_121, %c0_122] : memref<4x32x8xf32, #tpu.memory_space<vmem>>, vector<1x32x8xf32>
      %149 = vector.shape_cast %148 : vector<1x32x8xf32> to vector<32x8xf32>
      %cst_123 = arith.constant dense<0.000000e+00> : vector<8x8xf32>
      %150 = tpu.matmul %104, %149, %cst_123 {dimension_numbers = #tpu.dot_dimension_numbers<[1], [0], [0], [1], [0, 0, 1, 1], [], []>} : vector<8x32xf32>, vector<32x8xf32>, vector<8x8xf32> -> vector<8x8xf32>
      %c2_124 = arith.constant 2 : index
      %c0_125 = arith.constant 0 : index
      %c0_126 = arith.constant 0 : index
      %151 = vector.load %arg9[%c2_124, %c0_125, %c0_126] : memref<4x1x8xf32, #tpu.memory_space<vmem>>, vector<1x1x8xf32>
      %152 = vector.shape_cast %151 : vector<1x1x8xf32> to vector<1x8xf32>
      %153 = vector.broadcast %152 : vector<1x8xf32> to vector<8x8xf32>
      %154 = arith.addf %147, %153 : vector<8x8xf32>
      %c2_127 = arith.constant 2 : index
      %c0_128 = arith.constant 0 : index
      %c0_129 = arith.constant 0 : index
      %155 = vector.load %arg12[%c2_127, %c0_128, %c0_129] : memref<4x8x8xf32, #tpu.memory_space<vmem>>, vector<1x8x8xf32>
      %156 = vector.shape_cast %155 : vector<1x8x8xf32> to vector<8x8xf32>
      %157 = vector.shape_cast %154 : vector<8x8xf32> to vector<1x8x8xf32>
      tpu.vector_store %arg12[%c2_127, %c0_128, %c0_129], %157 {strides = array<i32>} : memref<4x8x8xf32, #tpu.memory_space<vmem>>, vector<1x8x8xf32>,
      %c2_130 = arith.constant 2 : index
      %c0_131 = arith.constant 0 : index
      %c0_132 = arith.constant 0 : index
      %158 = vector.load %arg10[%c2_130, %c0_131, %c0_132] : memref<4x1x8xf32, #tpu.memory_space<vmem>>, vector<1x1x8xf32>
      %159 = vector.shape_cast %158 : vector<1x1x8xf32> to vector<1x8xf32>
      %160 = vector.broadcast %159 : vector<1x8xf32> to vector<8x8xf32>
      %161 = arith.addf %150, %160 : vector<8x8xf32>
      %c2_133 = arith.constant 2 : index
      %c0_134 = arith.constant 0 : index
      %c0_135 = arith.constant 0 : index
      %162 = vector.load %arg13[%c2_133, %c0_134, %c0_135] : memref<4x8x8xf32, #tpu.memory_space<vmem>>, vector<1x8x8xf32>
      %163 = vector.shape_cast %162 : vector<1x8x8xf32> to vector<8x8xf32>
      %164 = vector.shape_cast %161 : vector<8x8xf32> to vector<1x8x8xf32>
      tpu.vector_store %arg13[%c2_133, %c0_134, %c0_135], %164 {strides = array<i32>} : memref<4x8x8xf32, #tpu.memory_space<vmem>>, vector<1x8x8xf32>,
      %c3_136 = arith.constant 3 : index
      %c0_137 = arith.constant 0 : index
      %c0_138 = arith.constant 0 : index
      %165 = vector.load %arg6[%c3_136, %c0_137, %c0_138] : memref<4x32x8xf32, #tpu.memory_space<vmem>>, vector<1x32x8xf32>
      %166 = vector.shape_cast %165 : vector<1x32x8xf32> to vector<32x8xf32>
      %cst_139 = arith.constant dense<0.000000e+00> : vector<8x8xf32>
      %167 = tpu.matmul %102, %166, %cst_139 {dimension_numbers = #tpu.dot_dimension_numbers<[1], [0], [0], [1], [0, 0, 1, 1], [], []>} : vector<8x32xf32>, vector<32x8xf32>, vector<8x8xf32> -> vector<8x8xf32>
      %c3_140 = arith.constant 3 : index
      %c0_141 = arith.constant 0 : index
      %c0_142 = arith.constant 0 : index
      %168 = vector.load %arg7[%c3_140, %c0_141, %c0_142] : memref<4x32x8xf32, #tpu.memory_space<vmem>>, vector<1x32x8xf32>
      %169 = vector.shape_cast %168 : vector<1x32x8xf32> to vector<32x8xf32>
      %cst_143 = arith.constant dense<0.000000e+00> : vector<8x8xf32>
      %170 = tpu.matmul %104, %169, %cst_143 {dimension_numbers = #tpu.dot_dimension_numbers<[1], [0], [0], [1], [0, 0, 1, 1], [], []>} : vector<8x32xf32>, vector<32x8xf32>, vector<8x8xf32> -> vector<8x8xf32>
      %c3_144 = arith.constant 3 : index
      %c0_145 = arith.constant 0 : index
      %c0_146 = arith.constant 0 : index
      %171 = vector.load %arg9[%c3_144, %c0_145, %c0_146] : memref<4x1x8xf32, #tpu.memory_space<vmem>>, vector<1x1x8xf32>
      %172 = vector.shape_cast %171 : vector<1x1x8xf32> to vector<1x8xf32>
      %173 = vector.broadcast %172 : vector<1x8xf32> to vector<8x8xf32>
      %174 = arith.addf %167, %173 : vector<8x8xf32>
      %c3_147 = arith.constant 3 : index
      %c0_148 = arith.constant 0 : index
      %c0_149 = arith.constant 0 : index
      %175 = vector.load %arg12[%c3_147, %c0_148, %c0_149] : memref<4x8x8xf32, #tpu.memory_space<vmem>>, vector<1x8x8xf32>
      %176 = vector.shape_cast %175 : vector<1x8x8xf32> to vector<8x8xf32>
      %177 = vector.shape_cast %174 : vector<8x8xf32> to vector<1x8x8xf32>
      tpu.vector_store %arg12[%c3_147, %c0_148, %c0_149], %177 {strides = array<i32>} : memref<4x8x8xf32, #tpu.memory_space<vmem>>, vector<1x8x8xf32>,
      %c3_150 = arith.constant 3 : index
      %c0_151 = arith.constant 0 : index
      %c0_152 = arith.constant 0 : index
      %178 = vector.load %arg10[%c3_150, %c0_151, %c0_152] : memref<4x1x8xf32, #tpu.memory_space<vmem>>, vector<1x1x8xf32>
      %179 = vector.shape_cast %178 : vector<1x1x8xf32> to vector<1x8xf32>
      %180 = vector.broadcast %179 : vector<1x8xf32> to vector<8x8xf32>
      %181 = arith.addf %170, %180 : vector<8x8xf32>
      %c3_153 = arith.constant 3 : index
      %c0_154 = arith.constant 0 : index
      %c0_155 = arith.constant 0 : index
      %182 = vector.load %arg13[%c3_153, %c0_154, %c0_155] : memref<4x8x8xf32, #tpu.memory_space<vmem>>, vector<1x8x8xf32>
      %183 = vector.shape_cast %182 : vector<1x8x8xf32> to vector<8x8xf32>
      %184 = vector.shape_cast %181 : vector<8x8xf32> to vector<1x8x8xf32>
      tpu.vector_store %arg13[%c3_153, %c0_154, %c0_155], %184 {strides = array<i32>} : memref<4x8x8xf32, #tpu.memory_space<vmem>>, vector<1x8x8xf32>,
    } else {
    }
    %c0 = arith.constant 0 : index
    %c0_1 = arith.constant 0 : index
    %c0_2 = arith.constant 0 : index
    %3 = vector.load %arg2[%c0, %c0_1, %c0_2] : memref<1x8x32xf32, #tpu.memory_space<vmem>>, vector<1x8x32xf32>
    %4 = vector.shape_cast %3 : vector<1x8x32xf32> to vector<8x32xf32>
    %c0_3 = arith.constant 0 : index
    %c0_4 = arith.constant 0 : index
    %c0_5 = arith.constant 0 : index
    %5 = vector.load %arg5[%c0_3, %c0_4, %c0_5] : memref<4x32x8xf32, #tpu.memory_space<vmem>>, vector<1x32x8xf32>
    %6 = vector.shape_cast %5 : vector<1x32x8xf32> to vector<32x8xf32>
    %cst = arith.constant dense<0.000000e+00> : vector<8x8xf32>
    %7 = tpu.matmul %4, %6, %cst {dimension_numbers = #tpu.dot_dimension_numbers<[1], [0], [0], [1], [0, 0, 1, 1], [], []>} : vector<8x32xf32>, vector<32x8xf32>, vector<8x8xf32> -> vector<8x8xf32>
    %c0_6 = arith.constant 0 : index
    %c0_7 = arith.constant 0 : index
    %c0_8 = arith.constant 0 : index
    %8 = vector.load %arg8[%c0_6, %c0_7, %c0_8] : memref<4x1x8xf32, #tpu.memory_space<vmem>>, vector<1x1x8xf32>
    %9 = vector.shape_cast %8 : vector<1x1x8xf32> to vector<1x8xf32>
    %10 = vector.broadcast %9 : vector<1x8xf32> to vector<8x8xf32>
    %11 = arith.addf %7, %10 : vector<8x8xf32>
    %c0_9 = arith.constant 0 : index
    %c0_10 = arith.constant 0 : index
    %c0_11 = arith.constant 0 : index
    %12 = vector.load %arg12[%c0_9, %c0_10, %c0_11] : memref<4x8x8xf32, #tpu.memory_space<vmem>>, vector<1x8x8xf32>
    %13 = vector.shape_cast %12 : vector<1x8x8xf32> to vector<8x8xf32>
    %c0_12 = arith.constant 0 : index
    %c0_13 = arith.constant 0 : index
    %c0_14 = arith.constant 0 : index
    %14 = vector.load %arg13[%c0_12, %c0_13, %c0_14] : memref<4x8x8xf32, #tpu.memory_space<vmem>>, vector<1x8x8xf32>
    %15 = vector.shape_cast %14 : vector<1x8x8xf32> to vector<8x8xf32>
    %cst_15 = arith.constant dense<0.000000e+00> : vector<8x8xf32>
    %16 = tpu.matmul %11, %13, %cst_15 {dimension_numbers = #tpu.dot_dimension_numbers<[1], [1], [0], [0], [0, 0, 1, 0], [], []>} : vector<8x8xf32>, vector<8x8xf32>, vector<8x8xf32> -> vector<8x8xf32>
    %cst_16 = arith.constant dense<0xFF800000> : vector<8xf32>
    %17 = vector.multi_reduction <maximumf>, %16, %cst_16 [1] : vector<8x8xf32> to vector<8xf32>
    %18 = vector.shape_cast %17 : vector<8xf32> to vector<8x1xf32>
    %19 = vector.broadcast %18 : vector<8x1xf32> to vector<8x8xf32>
    %20 = arith.subf %16, %19 : vector<8x8xf32>
    %21 = math.exp %20 : vector<8x8xf32>
    %cst_17 = arith.constant dense<0.000000e+00> : vector<8xf32>
    %22 = vector.multi_reduction <add>, %21, %cst_17 [1] : vector<8x8xf32> to vector<8xf32>
    %23 = vector.shape_cast %22 : vector<8xf32> to vector<8x1xf32>
    %cst_18 = arith.constant dense<0.000000e+00> : vector<8x8xf32>
    %24 = tpu.matmul %21, %15, %cst_18 {dimension_numbers = #tpu.dot_dimension_numbers<[1], [0], [0], [1], [0, 0, 1, 1], [], []>} : vector<8x8xf32>, vector<8x8xf32>, vector<8x8xf32> -> vector<8x8xf32>
    %25 = tpu.reciprocal %23 : vector<8x1xf32> -> vector<8x1xf32>
    %26 = vector.broadcast %25 : vector<8x1xf32> to vector<8x8xf32>
    %27 = arith.mulf %24, %26 : vector<8x8xf32>
    %c1 = arith.constant 1 : index
    %c0_19 = arith.constant 0 : index
    %c0_20 = arith.constant 0 : index
    %28 = vector.load %arg5[%c1, %c0_19, %c0_20] : memref<4x32x8xf32, #tpu.memory_space<vmem>>, vector<1x32x8xf32>
    %29 = vector.shape_cast %28 : vector<1x32x8xf32> to vector<32x8xf32>
    %cst_21 = arith.constant dense<0.000000e+00> : vector<8x8xf32>
    %30 = tpu.matmul %4, %29, %cst_21 {dimension_numbers = #tpu.dot_dimension_numbers<[1], [0], [0], [1], [0, 0, 1, 1], [], []>} : vector<8x32xf32>, vector<32x8xf32>, vector<8x8xf32> -> vector<8x8xf32>
    %c1_22 = arith.constant 1 : index
    %c0_23 = arith.constant 0 : index
    %c0_24 = arith.constant 0 : index
    %31 = vector.load %arg8[%c1_22, %c0_23, %c0_24] : memref<4x1x8xf32, #tpu.memory_space<vmem>>, vector<1x1x8xf32>
    %32 = vector.shape_cast %31 : vector<1x1x8xf32> to vector<1x8xf32>
    %33 = vector.broadcast %32 : vector<1x8xf32> to vector<8x8xf32>
    %34 = arith.addf %30, %33 : vector<8x8xf32>
    %c1_25 = arith.constant 1 : index
    %c0_26 = arith.constant 0 : index
    %c0_27 = arith.constant 0 : index
    %35 = vector.load %arg12[%c1_25, %c0_26, %c0_27] : memref<4x8x8xf32, #tpu.memory_space<vmem>>, vector<1x8x8xf32>
    %36 = vector.shape_cast %35 : vector<1x8x8xf32> to vector<8x8xf32>
    %c1_28 = arith.constant 1 : index
    %c0_29 = arith.constant 0 : index
    %c0_30 = arith.constant 0 : index
    %37 = vector.load %arg13[%c1_28, %c0_29, %c0_30] : memref<4x8x8xf32, #tpu.memory_space<vmem>>, vector<1x8x8xf32>
    %38 = vector.shape_cast %37 : vector<1x8x8xf32> to vector<8x8xf32>
    %cst_31 = arith.constant dense<0.000000e+00> : vector<8x8xf32>
    %39 = tpu.matmul %34, %36, %cst_31 {dimension_numbers = #tpu.dot_dimension_numbers<[1], [1], [0], [0], [0, 0, 1, 0], [], []>} : vector<8x8xf32>, vector<8x8xf32>, vector<8x8xf32> -> vector<8x8xf32>
    %cst_32 = arith.constant dense<0xFF800000> : vector<8xf32>
    %40 = vector.multi_reduction <maximumf>, %39, %cst_32 [1] : vector<8x8xf32> to vector<8xf32>
    %41 = vector.shape_cast %40 : vector<8xf32> to vector<8x1xf32>
    %42 = vector.broadcast %41 : vector<8x1xf32> to vector<8x8xf32>
    %43 = arith.subf %39, %42 : vector<8x8xf32>
    %44 = math.exp %43 : vector<8x8xf32>
    %cst_33 = arith.constant dense<0.000000e+00> : vector<8xf32>
    %45 = vector.multi_reduction <add>, %44, %cst_33 [1] : vector<8x8xf32> to vector<8xf32>
    %46 = vector.shape_cast %45 : vector<8xf32> to vector<8x1xf32>
    %cst_34 = arith.constant dense<0.000000e+00> : vector<8x8xf32>
    %47 = tpu.matmul %44, %38, %cst_34 {dimension_numbers = #tpu.dot_dimension_numbers<[1], [0], [0], [1], [0, 0, 1, 1], [], []>} : vector<8x8xf32>, vector<8x8xf32>, vector<8x8xf32> -> vector<8x8xf32>
    %48 = tpu.reciprocal %46 : vector<8x1xf32> -> vector<8x1xf32>
    %49 = vector.broadcast %48 : vector<8x1xf32> to vector<8x8xf32>
    %50 = arith.mulf %47, %49 : vector<8x8xf32>
    %c2 = arith.constant 2 : index
    %c0_35 = arith.constant 0 : index
    %c0_36 = arith.constant 0 : index
    %51 = vector.load %arg5[%c2, %c0_35, %c0_36] : memref<4x32x8xf32, #tpu.memory_space<vmem>>, vector<1x32x8xf32>
    %52 = vector.shape_cast %51 : vector<1x32x8xf32> to vector<32x8xf32>
    %cst_37 = arith.constant dense<0.000000e+00> : vector<8x8xf32>
    %53 = tpu.matmul %4, %52, %cst_37 {dimension_numbers = #tpu.dot_dimension_numbers<[1], [0], [0], [1], [0, 0, 1, 1], [], []>} : vector<8x32xf32>, vector<32x8xf32>, vector<8x8xf32> -> vector<8x8xf32>
    %c2_38 = arith.constant 2 : index
    %c0_39 = arith.constant 0 : index
    %c0_40 = arith.constant 0 : index
    %54 = vector.load %arg8[%c2_38, %c0_39, %c0_40] : memref<4x1x8xf32, #tpu.memory_space<vmem>>, vector<1x1x8xf32>
    %55 = vector.shape_cast %54 : vector<1x1x8xf32> to vector<1x8xf32>
    %56 = vector.broadcast %55 : vector<1x8xf32> to vector<8x8xf32>
    %57 = arith.addf %53, %56 : vector<8x8xf32>
    %c2_41 = arith.constant 2 : index
    %c0_42 = arith.constant 0 : index
    %c0_43 = arith.constant 0 : index
    %58 = vector.load %arg12[%c2_41, %c0_42, %c0_43] : memref<4x8x8xf32, #tpu.memory_space<vmem>>, vector<1x8x8xf32>
    %59 = vector.shape_cast %58 : vector<1x8x8xf32> to vector<8x8xf32>
    %c2_44 = arith.constant 2 : index
    %c0_45 = arith.constant 0 : index
    %c0_46 = arith.constant 0 : index
    %60 = vector.load %arg13[%c2_44, %c0_45, %c0_46] : memref<4x8x8xf32, #tpu.memory_space<vmem>>, vector<1x8x8xf32>
    %61 = vector.shape_cast %60 : vector<1x8x8xf32> to vector<8x8xf32>
    %cst_47 = arith.constant dense<0.000000e+00> : vector<8x8xf32>
    %62 = tpu.matmul %57, %59, %cst_47 {dimension_numbers = #tpu.dot_dimension_numbers<[1], [1], [0], [0], [0, 0, 1, 0], [], []>} : vector<8x8xf32>, vector<8x8xf32>, vector<8x8xf32> -> vector<8x8xf32>
    %cst_48 = arith.constant dense<0xFF800000> : vector<8xf32>
    %63 = vector.multi_reduction <maximumf>, %62, %cst_48 [1] : vector<8x8xf32> to vector<8xf32>
    %64 = vector.shape_cast %63 : vector<8xf32> to vector<8x1xf32>
    %65 = vector.broadcast %64 : vector<8x1xf32> to vector<8x8xf32>
    %66 = arith.subf %62, %65 : vector<8x8xf32>
    %67 = math.exp %66 : vector<8x8xf32>
    %cst_49 = arith.constant dense<0.000000e+00> : vector<8xf32>
    %68 = vector.multi_reduction <add>, %67, %cst_49 [1] : vector<8x8xf32> to vector<8xf32>
    %69 = vector.shape_cast %68 : vector<8xf32> to vector<8x1xf32>
    %cst_50 = arith.constant dense<0.000000e+00> : vector<8x8xf32>
    %70 = tpu.matmul %67, %61, %cst_50 {dimension_numbers = #tpu.dot_dimension_numbers<[1], [0], [0], [1], [0, 0, 1, 1], [], []>} : vector<8x8xf32>, vector<8x8xf32>, vector<8x8xf32> -> vector<8x8xf32>
    %71 = tpu.reciprocal %69 : vector<8x1xf32> -> vector<8x1xf32>
    %72 = vector.broadcast %71 : vector<8x1xf32> to vector<8x8xf32>
    %73 = arith.mulf %70, %72 : vector<8x8xf32>
    %c3 = arith.constant 3 : index
    %c0_51 = arith.constant 0 : index
    %c0_52 = arith.constant 0 : index
    %74 = vector.load %arg5[%c3, %c0_51, %c0_52] : memref<4x32x8xf32, #tpu.memory_space<vmem>>, vector<1x32x8xf32>
    %75 = vector.shape_cast %74 : vector<1x32x8xf32> to vector<32x8xf32>
    %cst_53 = arith.constant dense<0.000000e+00> : vector<8x8xf32>
    %76 = tpu.matmul %4, %75, %cst_53 {dimension_numbers = #tpu.dot_dimension_numbers<[1], [0], [0], [1], [0, 0, 1, 1], [], []>} : vector<8x32xf32>, vector<32x8xf32>, vector<8x8xf32> -> vector<8x8xf32>
    %c3_54 = arith.constant 3 : index
    %c0_55 = arith.constant 0 : index
    %c0_56 = arith.constant 0 : index
    %77 = vector.load %arg8[%c3_54, %c0_55, %c0_56] : memref<4x1x8xf32, #tpu.memory_space<vmem>>, vector<1x1x8xf32>
    %78 = vector.shape_cast %77 : vector<1x1x8xf32> to vector<1x8xf32>
    %79 = vector.broadcast %78 : vector<1x8xf32> to vector<8x8xf32>
    %80 = arith.addf %76, %79 : vector<8x8xf32>
    %c3_57 = arith.constant 3 : index
    %c0_58 = arith.constant 0 : index
    %c0_59 = arith.constant 0 : index
    %81 = vector.load %arg12[%c3_57, %c0_58, %c0_59] : memref<4x8x8xf32, #tpu.memory_space<vmem>>, vector<1x8x8xf32>
    %82 = vector.shape_cast %81 : vector<1x8x8xf32> to vector<8x8xf32>
    %c3_60 = arith.constant 3 : index
    %c0_61 = arith.constant 0 : index
    %c0_62 = arith.constant 0 : index
    %83 = vector.load %arg13[%c3_60, %c0_61, %c0_62] : memref<4x8x8xf32, #tpu.memory_space<vmem>>, vector<1x8x8xf32>
    %84 = vector.shape_cast %83 : vector<1x8x8xf32> to vector<8x8xf32>
    %cst_63 = arith.constant dense<0.000000e+00> : vector<8x8xf32>
    %85 = tpu.matmul %80, %82, %cst_63 {dimension_numbers = #tpu.dot_dimension_numbers<[1], [1], [0], [0], [0, 0, 1, 0], [], []>} : vector<8x8xf32>, vector<8x8xf32>, vector<8x8xf32> -> vector<8x8xf32>
    %cst_64 = arith.constant dense<0xFF800000> : vector<8xf32>
    %86 = vector.multi_reduction <maximumf>, %85, %cst_64 [1] : vector<8x8xf32> to vector<8xf32>
    %87 = vector.shape_cast %86 : vector<8xf32> to vector<8x1xf32>
    %88 = vector.broadcast %87 : vector<8x1xf32> to vector<8x8xf32>
    %89 = arith.subf %85, %88 : vector<8x8xf32>
    %90 = math.exp %89 : vector<8x8xf32>
    %cst_65 = arith.constant dense<0.000000e+00> : vector<8xf32>
    %91 = vector.multi_reduction <add>, %90, %cst_65 [1] : vector<8x8xf32> to vector<8xf32>
    %92 = vector.shape_cast %91 : vector<8xf32> to vector<8x1xf32>
    %cst_66 = arith.constant dense<0.000000e+00> : vector<8x8xf32>
    %93 = tpu.matmul %90, %84, %cst_66 {dimension_numbers = #tpu.dot_dimension_numbers<[1], [0], [0], [1], [0, 0, 1, 1], [], []>} : vector<8x8xf32>, vector<8x8xf32>, vector<8x8xf32> -> vector<8x8xf32>
    %94 = tpu.reciprocal %92 : vector<8x1xf32> -> vector<8x1xf32>
    %95 = vector.broadcast %94 : vector<8x1xf32> to vector<8x8xf32>
    %96 = arith.mulf %93, %95 : vector<8x8xf32>
    %97 = tpu.concatenate %27, %50, %73, %96 in 1 : vector<8x8xf32>, vector<8x8xf32>, vector<8x8xf32>, vector<8x8xf32> -> vector<8x32xf32>
    %c0_67 = arith.constant 0 : index
    %c0_68 = arith.constant 0 : index
    %c0_69 = arith.constant 0 : index
    %98 = vector.load %arg11[%c0_67, %c0_68, %c0_69] : memref<1x8x32xf32, #tpu.memory_space<vmem>>, vector<1x8x32xf32>
    %99 = vector.shape_cast %98 : vector<1x8x32xf32> to vector<8x32xf32>
    %100 = vector.shape_cast %97 : vector<8x32xf32> to vector<1x8x32xf32>
    tpu.vector_store %arg11[%c0_67, %c0_68, %c0_69], %100 {strides = array<i32>} : memref<1x8x32xf32, #tpu.memory_space<vmem>>, vector<1x8x32xf32>,
    return
  }
  func.func @transform_0(%arg0: i32, %arg1: i32) -> (i32, i32, i32) {
    %c0_i32 = arith.constant 0 : i32
    %c0_i32_0 = arith.constant 0 : i32
    return %arg0, %arg1, %c0_i32 : i32, i32, i32
  }
  func.func @transform_1(%arg0: i32, %arg1: i32) -> (i32, i32, i32) {
    %c0_i32 = arith.constant 0 : i32
    %c0_i32_0 = arith.constant 0 : i32
    %c0_i32_1 = arith.constant 0 : i32
    return %arg0, %c0_i32, %c0_i32_0 : i32, i32, i32
  }
  func.func @transform_2(%arg0: i32, %arg1: i32) -> (i32, i32, i32) {
    %c0_i32 = arith.constant 0 : i32
    %c0_i32_0 = arith.constant 0 : i32
    %c0_i32_1 = arith.constant 0 : i32
    return %arg0, %c0_i32, %c0_i32_0 : i32, i32, i32
  }
  func.func @transform_3(%arg0: i32, %arg1: i32) -> (i32, i32, i32) {
    %c0_i32 = arith.constant 0 : i32
    %c0_i32_0 = arith.constant 0 : i32
    %c0_i32_1 = arith.constant 0 : i32
    %c0_i32_2 = arith.constant 0 : i32
    return %c0_i32, %c0_i32_0, %c0_i32_1 : i32, i32, i32
  }
  func.func @transform_4(%arg0: i32, %arg1: i32) -> (i32, i32, i32) {
    %c0_i32 = arith.constant 0 : i32
    %c0_i32_0 = arith.constant 0 : i32
    %c0_i32_1 = arith.constant 0 : i32
    %c0_i32_2 = arith.constant 0 : i32
    return %c0_i32, %c0_i32_0, %c0_i32_1 : i32, i32, i32
  }
  func.func @transform_5(%arg0: i32, %arg1: i32) -> (i32, i32, i32) {
    %c0_i32 = arith.constant 0 : i32
    %c0_i32_0 = arith.constant 0 : i32
    %c0_i32_1 = arith.constant 0 : i32
    %c0_i32_2 = arith.constant 0 : i32
    return %c0_i32, %c0_i32_0, %c0_i32_1 : i32, i32, i32
  }
  func.func @transform_6(%arg0: i32, %arg1: i32) -> (i32, i32, i32) {
    %c0_i32 = arith.constant 0 : i32
    %c0_i32_0 = arith.constant 0 : i32
    %c0_i32_1 = arith.constant 0 : i32
    %c0_i32_2 = arith.constant 0 : i32
    return %c0_i32, %c0_i32_0, %c0_i32_1 : i32, i32, i32
  }
  func.func @transform_7(%arg0: i32, %arg1: i32) -> (i32, i32, i32) {
    %c0_i32 = arith.constant 0 : i32
    %c0_i32_0 = arith.constant 0 : i32
    %c0_i32_1 = arith.constant 0 : i32
    %c0_i32_2 = arith.constant 0 : i32
    return %c0_i32, %c0_i32_0, %c0_i32_1 : i32, i32, i32
  }
  func.func @transform_8(%arg0: i32, %arg1: i32) -> (i32, i32, i32) {
    %c0_i32 = arith.constant 0 : i32
    %c0_i32_0 = arith.constant 0 : i32
    %c0_i32_1 = arith.constant 0 : i32
    %c0_i32_2 = arith.constant 0 : i32
    return %c0_i32, %c0_i32_0, %c0_i32_1 : i32, i32, i32
  }
  func.func @transform_9(%arg0: i32, %arg1: i32) -> (i32, i32, i32) {
    %c0_i32 = arith.constant 0 : i32
    %c0_i32_0 = arith.constant 0 : i32
    return %arg0, %arg1, %c0_i32 : i32, i32, i32
  }
}

</mosaic_0001>

<bundles_post_ra>
// kernel: tpu_custom_call.1
= control target key start
LH: loop header
LB: loop body
LE: loop exit
PB: predicated region body
PF: predicated region fallthrough
CT: control target
= control target key end

     0   :  { %s1857_s0 = inlined_call_operand.vmem [shape: f32[2,8,32], index: 0, kind: input, shape index: {}]   ;;  %s1858_s1 = inlined_call_operand.vmem [shape: f32[2,8,32], index: 1, kind: input, shape index: {}]   ;;  %s1859_s2 = inlined_call_operand.vmem [shape: f32[2,8,32], index: 2, kind: input, shape index: {}]   ;;  %s1860_s3 = inlined_call_operand.vmem [shape: f32[4,32,8], index: 3, kind: input, shape index: {}]   ;;  %s1861_s4 = inlined_call_operand.vmem [shape: f32[4,32,8], index: 4, kind: input, shape index: {}]   ;;  %s1862_s5 = inlined_call_operand.vmem [shape: f32[4,32,8], index: 5, kind: input, shape index: {}]   ;;  %s1863_s6 = inlined_call_operand.vmem [shape: f32[4,1,8], index: 6, kind: input, shape index: {}]   ;;  %s1864_s7 = inlined_call_operand.vmem [shape: f32[4,1,8], index: 7, kind: input, shape index: {}]   ;;  %s1865_s8 = inlined_call_operand.vmem [shape: f32[4,1,8], index: 8, kind: input, shape index: {}]   ;;  %s1866_s9 = inlined_call_operand.hbm [shape: f32[2,8,32], index: 9, kind: output, shape index: {}]  }
   0x1   :  { %1867 = sst [smem:[#allocation7_spill]] %s1858_s1 }
   0x2   :  { %14 = vsyncpa [#allocation5], 0 }
   0x3   :  { %16 = vsyncpa [#allocation5 + $0x1], 0  ;;  %s1512_s30 = smov 0   ;;  %s1514_s10 = smov 0  }
   0x4   :  { %s1516_s11 = smov 0   ;;  %s1518_s12 = smov 0  }
   0x5   :  { %s1520_s13 = smov 0   ;;  %s1522_s14 = smov 0  }
   0x6 LB: > { %s1211_s15 = sadd.s32 4294967295, %s1457_s14   ;;  %s1212_s16 = sadd.s32 4294967294, %s1457_s14   ;;  %s1457_s14 = sphi %s1522_s14, %s22_s14   ;;  %s1453_s13 = sphi %s1520_s13, %s1875_s13   ;;  %s1449_s12 = sphi %s1518_s12, %s1874_s12   ;;  %s1445_s11 = sphi %s1516_s11, %s1873_s11   ;;  %s1441_s10 = sphi %s1514_s10, %s1872_s10   ;;  %s1437_s30 = sphi %s1512_s30, %s1871_s30  }
   0x7   : > { %s34_s17 = sadd.s32 1, %s1453_s13  ;;  %s249_s18 = sadd.s32 1, %s1445_s11 }
   0x8   : > { %p36_p0 = scmp.ge.s32.totalorder %s34_s17, 2  ;;  %p259_p1 = scmp.ne.s32.totalorder %s1445_s11, %s1441_s10 }
   0x9   : > { %p260_p2 = scmp.eq.s32.totalorder %s1211_s15, 1  ;;  %p265_p3 = scmp.ne.s32.totalorder %s1441_s10, %s1437_s30 }
   0xa   : > { %s1877_s17 = smov (%p36_p0, %s34_s17), 0  ;;  %p266_p5 = scmp.eq.s32.totalorder %s1212_s16, 1 }
   0xb   : > { %p1552_p4 = por %p260_p2, %p259_p1  ;;  %s244_s20 = ssub.s32 %s1453_s13, %s1877_s17 }
   0xc   : > { %p1215_p6 = scmp.ge.s32.totalorder %s1457_s14, 1  ;;  %p247_p7 = scmp.eq.s32.totalorder %s244_s20, 0 }
   0xd   : > { %p1559_p8 = por %p266_p5, %p265_p3  ;;  %p326_p9 = scmp.lt.s32.totalorder %s1457_s14, 3 }
   0xe   : > { %s1565_s22 = scalar_select %p247_p7, %s1445_s11, %s249_s18  }
   0xf   : > { %p327_p10 = pnand %p1215_p6, %p326_p9 }
  0x10   : > { %p372_p11 = scmp.lt.s32.totalorder (!%p327_p10), %s1449_s12, 1  ;;  %s1870_s1 = sld [smem:[#allocation7_spill]] (!%p327_p10) }
  0x11   : > { %330 = sbr.rel (%p327_p10) target bundleno = 1097 (0x449), region = 56  ;;  %s1290_s24 = sshll.u32 (!%p327_p10), %s1449_s12, 3 }
  0x12   : > { %s1111_s29 = scalar_lea.hbm (!%p327_p10), %s1866_s9, %s1290_s24  ;;  %s1399_s24 = scalar_lea.hbm (!%p327_p10), %s1866_s9, 16 }
  0x13   : > { %s1115_s16 = sshll.u32 (!%p327_p10), %s1111_s29, 4  ;;  %s1116_s16 = int_to_ptr.hbm [resolvable:$true] %s1115_s16 }
  0x16   : > { %v396_v0 = vld [vmem:[%s1861_s4 + $0x18] sm:$0xff]  ;;  %v395_v1 = vld [vmem:[%s1861_s4 + $0x10] sm:$0xff]  ;;  %v394_v5 = vld [vmem:[%s1861_s4 + $0x8] sm:$0xff]  ;;  %s373_s28 = scalar_select %p372_p11, %s1449_s12, 1  ;;  %vm405_vm0 = vcmask 261120   ;;  %vm429_vm1 = vcmask 64512  }
  0x17   : > { %v1225_v2 = vld [vmem:[%s1861_s4 + $0x38] sm:$0xff]  ;;  %421 = vmatpush.msra.mxu0 %v396_v0  ;;  %v1224_v4 = vld [vmem:[%s1861_s4 + $0x30] sm:$0xff]  ;;  %v1223_v7 = vld [vmem:[%s1861_s4 + $0x28] sm:$0xff] }
  0x18   : > { %486 = vmatpush.msra.mxu2 %v1225_v2  ;;  %v1229_v3 = vld [vmem:[%s1862_s5 + $0x38] sm:$0xff]  ;;  %v1228_v6 = vld [vmem:[%s1862_s5 + $0x30] sm:$0xff]  ;;  %v1227_v8 = vld [vmem:[%s1862_s5 + $0x28] sm:$0xff]  ;;  %s1599_s20 = sshll.u32 %s373_s28, 3  ;;  %s1461_s28 = smov 16  }
  0x19   : > { %513 = vmatpush.msra.mxu3 %v1229_v3  ;;  %422 = vmatpush.msra.mxu0 %v395_v1  ;;  %v393_v9 = vld [vmem:[%s1861_s4] sm:$0xff]  ;;  %s382_s27 = scalar_lea.vmem %s1870_s1, %s1599_s20  ;;  %s386_s18 = scalar_lea.vmem %s1859_s2, %s1599_s20  ;;  %v1237_v13 = vld [vmem:[%s1861_s4 + $0x58] sm:$0xff]  ;;  %v1236_v15 = vld [vmem:[%s1861_s4 + $0x50] sm:$0xff] }
  0x1a   : > { %487 = vmatpush.msra.mxu2 %v1224_v4  ;;  %v1222_v10 = vld [vmem:[%s1861_s4 + $0x20] sm:$0xff]  ;;  %v1253_v16 = vld [vmem:[%s1862_s5 + $0x78] sm:$0xff]  ;;  %v1235_v17 = vld [vmem:[%s1861_s4 + $0x48] sm:$0xff]  ;;  %s378_s25 = scalar_lea.vmem %s1857_s0, %s1599_s20  ;;  %s1459_s20 = smov 8  }
  0x1b   : > { %514 = vmatpush.msra.mxu3 %v1228_v6  ;;  %423 = vmatpush.msra.mxu0 %v394_v5  ;;  %v1226_v11 = vld [vmem:[%s1862_s5 + $0x20] sm:$0xff]  ;;  %v1252_v18 = vld [vmem:[%s1862_s5 + $0x70] sm:$0xff]  ;;  %v1251_v20 = vld [vmem:[%s1862_s5 + $0x68] sm:$0xff]  ;;  %s1460_s1 = smov 24  }
  0x1c   : > { %488 = vmatpush.msra.mxu2 %v1223_v7  ;;  %v1615_v12 = vld [vmem:[%s382_s27] sm:$0xff]  ;;  %v400_v21 = vld [vmem:[%s1862_s5 + $0x18] sm:$0xff]  ;;  %v399_v22 = vld [vmem:[%s1862_s5 + $0x10] sm:$0xff] }
  0x1d   : > { %515 = vmatpush.msra.mxu3 %v1227_v8  ;;  %424 = vmatpush.msra.mxu0 %v393_v9  ;;  %v392_v14 = vld [vmem:[%s386_s18] sm:$0xff]  ;;  %v655_v24 = vld [vmem:[%s1860_s3 + $0x18] sm:$0xff]  ;;  %v654_v25 = vld [vmem:[%s1860_s3 + $0x10] sm:$0xff]  ;;  %s369_s18 = sand.u32 1, %s1441_s10  }
  0x1e   : > { %489 = vmatpush.msra.mxu2 %v1222_v10  ;;  %1220 = vmatmul.msk.f32.vlgmr.msra.gmra.mxu0 %vm405_vm0, %v1615_v12  ;;  %v1234_v19 = vld [vmem:[%s1861_s4 + $0x40] sm:$0xff]  ;;  %v1265_v26 = vld [vmem:[%s1860_s3 + $0x38] sm:$0xff]  ;;  %v653_v27 = vld [vmem:[%s1860_s3 + $0x8] sm:$0xff]  ;;  %s1216_s23 = sshll.u32 %s369_s18, 3  ;;  %s1100_s12 = scalar_lea.sflag [#allocation5], %s369_s18 }
  0x1f   : > { %516 = vmatpush.msra.mxu3 %v1226_v11  ;;  %550 = vmatpush.msrb.mxu0 %v1237_v13  ;;  %v1250_v23 = vld [vmem:[%s1862_s5 + $0x60] sm:$0xff]  ;;  %v1264_v28 = vld [vmem:[%s1860_s3 + $0x30] sm:$0xff]  ;;  %v1263_v30 = vld [vmem:[%s1860_s3 + $0x28] sm:$0xff]  ;;  %s371_s15 = scalar_lea.vmem [#allocation4], %s1216_s23 }
  0x20   : > { %1231 = vmatmul.msk.f32.vlgmr.msra.gmra.mxu2 %vm405_vm0, %v1615_v12  ;;  %1233 = vmatmul.msk.f32.vlgmr.msra.gmra.mxu3 %vm405_vm0, %v392_v14  ;;  %v652_v29 = vld [vmem:[%s1860_s3] sm:$0xff]  ;;  %v398_v33 = vld [vmem:[%s1862_s5 + $0x8] sm:$0xff]  ;;  %v1241_v35 = vld [vmem:[%s1862_s5 + $0x58] sm:$0xff]  ;;  %s1113_s27 = sshll.u32 %s371_s15, 4  ;;  %s1114_s27 = int_to_ptr.vmem [resolvable:$true] %s1113_s27 }
  0x21   : > { %551 = vmatpush.msrb.mxu0 %v1236_v15  ;;  %641 = vmatpush.msrb.mxu3 %v1253_v16  ;;  %v1680_v31 = vld [vmem:[%s378_s25] sm:$0xff]  ;;  %v1240_v36 = vld [vmem:[%s1862_s5 + $0x50] sm:$0xff]  ;;  %v1239_v37 = vld [vmem:[%s1862_s5 + $0x48] sm:$0xff] }
  0x22   : > { %450 = vmatpush.msra.mxu1 %v400_v21  ;;  %v1262_v32 = vld [vmem:[%s1860_s3 + $0x20] sm:$0xff]  ;;  %v1249_v1 = vld [vmem:[%s1861_s4 + $0x78] sm:$0xff]  ;;  %v1248_v2 = vld [vmem:[%s1861_s4 + $0x70] sm:$0xff] }
  0x23   : > { %552 = vmatpush.msrb.mxu0 %v1235_v17  ;;  %642 = vmatpush.msrb.mxu3 %v1252_v18  ;;  %v397_v34 = vld [vmem:[%s1862_s5] sm:$0xff]  ;;  %v1247_v3 = vld [vmem:[%s1861_s4 + $0x68] sm:$0xff]  ;;  %v1283_v17 = vld [vmem:[%s1860_s3 + $0x78] sm:$0xff] }
  0x24   : > { %451 = vmatpush.msra.mxu1 %v399_v22  ;;  %v1238_v38 = vld [vmem:[%s1862_s5 + $0x40] sm:$0xff]  ;;  %614 = vmatpush.msrb.mxu2 %v1249_v1  ;;  %v1274_v18 = vld [vmem:[%s1860_s3 + $0x58] sm:$0xff]  ;;  %v1281_v21 = vld [vmem:[%s1860_s3 + $0x68] sm:$0xff] }
  0x25   : > { %553 = vmatpush.msrb.mxu0 %v1234_v19  ;;  %643 = vmatpush.msrb.mxu3 %v1251_v20  ;;  %v1351_v39 = vld [vmem:[%s1864_s7] ss:$0 sm:$0xff]  ;;  %v1352_v42 = vld [vmem:[%s1864_s7 + $0x1] ss:$0 sm:$0xff]  ;;  %v1354_v44 = vld [vmem:[%s1864_s7 + $0x2] ss:$0 sm:$0xff] }
  0x26   : > { %1243 = vmatmul.msk.f32.vlgmr.msrb.gmra.mxu0 %vm405_vm0, %v1615_v12  ;;  %452 = vmatpush.msra.mxu1 %v398_v33  ;;  %v1353_v43 = vld [vmem:[%s1865_s8 + $0x1] ss:$0 sm:$0xff]  ;;  %v1355_v52 = vld [vmem:[%s1865_s8 + $0x3] ss:$0 sm:$0xff]  ;;  %v1356_v53 = vld [vmem:[%s1863_s6] ss:$0 sm:$0xff] }
  0x27   : > { %644 = vmatpush.msrb.mxu3 %v1250_v23  ;;  %676 = vmatpush.msra.mxu0 %v655_v24  ;;  %v1357_v61 = vld [vmem:[%s1863_s6 + $0x1] ss:$0 sm:$0xff]  ;;  %v1358_v5 = vld [vmem:[%s1865_s8] ss:$0 sm:$0xff]  ;;  %v1359_v8 = vld [vmem:[%s1865_s8 + $0x2] ss:$0 sm:$0xff] }
  0x28   : > { %1257 = vmatmul.msk.f32.vlgmr.msrb.gmra.mxu3 %vm405_vm0, %v392_v14  ;;  %453 = vmatpush.msra.mxu1 %v397_v34  ;;  %v1246_v4 = vld [vmem:[%s1861_s4 + $0x60] sm:$0xff]  ;;  %v1282_v19 = vld [vmem:[%s1860_s3 + $0x70] sm:$0xff]  ;;  %v1272_v22 = vld [vmem:[%s1860_s3 + $0x48] sm:$0xff] }
  0x29   : > { %677 = vmatpush.msra.mxu0 %v654_v25  ;;  %782 = vmatpush.msra.mxu3 %v1265_v26  ;;  %v1273_v20 = vld [vmem:[%s1860_s3 + $0x50] sm:$0xff]  ;;  %v1280_v23 = vld [vmem:[%s1860_s3 + $0x60] sm:$0xff] }
  0x2a   : > { %1221 = vmatmul.msk.f32.vlgmr.msra.gmra.mxu1 %vm405_vm0, %v392_v14  ;;  %615 = vmatpush.msrb.mxu2 %v1248_v2  ;;  %v1271_v24 = vld [vmem:[%s1860_s3 + $0x40] sm:$0xff] }
  0x2b   : > { %678 = vmatpush.msra.mxu0 %v653_v27  ;;  %783 = vmatpush.msra.mxu3 %v1264_v28  ;;  %v1360_v25 = vld [vmem:[%s1864_s7 + $0x3] ss:$0 sm:$0xff] }
  0x2c   : > { %577 = vmatpush.msrb.mxu1 %v1241_v35  ;;  %616 = vmatpush.msrb.mxu2 %v1247_v3 }
  0x2d   : > { %679 = vmatpush.msra.mxu0 %v652_v29  ;;  %784 = vmatpush.msra.mxu3 %v1263_v30 }
  0x2e   : > { %1258 = vmatmul.msk.f32.vlgmr.msra.gmra.mxu0 %vm405_vm0, %v1680_v31  ;;  %578 = vmatpush.msrb.mxu1 %v1240_v36 }
  0x2f   : > { %785 = vmatpush.msra.mxu3 %v1262_v32  ;;  %617 = vmatpush.msrb.mxu2 %v1246_v4 }
  0x30   : > { %1267 = vmatmul.msk.f32.vlgmr.msra.gmra.mxu3 %vm405_vm0, %v1680_v31  ;;  %579 = vmatpush.msrb.mxu1 %v1239_v37 }
  0x31   : > { %1255 = vmatmul.msk.f32.vlgmr.msrb.gmra.mxu2 %vm405_vm0, %v1615_v12 }
  0x32   : > { %580 = vmatpush.msrb.mxu1 %v1238_v38 }
  0x33   : > { %1245 = vmatmul.msk.f32.vlgmr.msrb.gmra.mxu1 %vm405_vm0, %v392_v14 }
  0x9b   : > { %v426_v40 = vpop.f32.mrf.mxu0 }
  0x9c   : > { %v427_v41 = vadd.f32 %v1351_v39, %v426_v40 }
  0x9e   : > { %430 = vst.msk [vmem:[#allocation2] sm:$0xff] %vm429_vm1, %v427_v41  ;;  %v1362_v41 = vld [vmem:[%s1863_s6 + $0x2] ss:$0 sm:$0xff] }
  0xa3   : > { %v491_v45 = vpop.f32.mrf.mxu2  ;;  %v518_v47 = vpop.f32.mrf.mxu3 }
  0xa4   : > { %v492_v46 = vadd.f32 %v1352_v42, %v491_v45  ;;  %v555_v48 = vpop.f32.mrf.mxu0  ;;  %v519_v49 = vadd.f32 %v1353_v43, %v518_v47  ;;  %v1361_v42 = vld [vmem:[%s1863_s6 + $0x3] ss:$0 sm:$0xff] }
  0xa5   : > { %v556_v50 = vadd.f32 %v1354_v44, %v555_v48  ;;  %v684_v51 = vld [vmem:[#allocation2] sm:$0xff] }
  0xa6   : > { %495 = vst.msk [vmem:[#allocation2 + $0x8] sm:$0xff] %vm429_vm1, %v492_v46  ;;  %1259 = vmatpush.xpose.msk.msra.mxu1 %vm429_vm1, %v684_v51 }
  0xa7   : > { %522 = vst.msk [vmem:[#allocation3 + $0x8] sm:$0xff] %vm429_vm1, %v519_v49  ;;  %v455_v6 = vpop.f32.mrf.mxu1 }
  0xa8   : > { %559 = vst.msk [vmem:[#allocation2 + $0x10] sm:$0xff] %vm429_vm1, %v556_v50  ;;  %v456_v7 = vadd.f32 %v1358_v5, %v455_v6 }
  0xaa   : > { %458 = vst.msk [vmem:[#allocation3] sm:$0xff] %vm429_vm1, %v456_v7 }
  0xab   : > { %v646_v54 = vpop.f32.mrf.mxu3 }
  0xac   : > { %v681_v55 = vpop.f32.mrf.mxu0  ;;  %v647_v56 = vadd.f32 %v1355_v52, %v646_v54 }
  0xad   : > { %v682_v57 = vadd.f32 %v1356_v53, %v681_v55  ;;  %v791_v58 = vld [vmem:[#allocation2 + $0x8] sm:$0xff] }
  0xae   : > { %1268 = vmatpush.xpose.msk.msrb.mxu0 %vm429_vm1, %v791_v58  ;;  %v793_v59 = vld [vmem:[#allocation3 + $0x8] sm:$0xff]  ;;  %650 = vst.msk [vmem:[#allocation3 + $0x18] sm:$0xff] %vm429_vm1, %v647_v56 }
  0xaf   : > { %1260 = vmatmul.msk.f32.vlgmr.msra.gmra.mxu1 %vm429_vm1, %v682_v57  ;;  %v898_v60 = vld [vmem:[#allocation2 + $0x10] sm:$0xff] }
  0xb0   : > { %847 = vmatpush.msrb.mxu1 %v793_v59  ;;  %1277 = vmatpush.xpose.msk.msrb.mxu3 %vm429_vm1, %v898_v60  ;;  %v582_v9 = vpop.f32.mrf.mxu1 }
  0xb1   : > { %v583_v10 = vadd.f32 %v1359_v8, %v582_v9  ;;  %v685_v11 = vld [vmem:[#allocation3] sm:$0xff] }
  0xb2   : > { %740 = vmatpush.msra.mxu2 %v685_v11  ;;  %996 = vmatpush.msra.mxu1 %v1283_v17 }
  0xb3   : > { %v787_v62 = vpop.f32.mrf.mxu3  ;;  %586 = vst.msk [vmem:[#allocation3 + $0x10] sm:$0xff] %vm429_vm1, %v583_v10 }
  0xb4   : > { %v788_v63 = vadd.f32 %v1357_v61, %v787_v62  ;;  %889 = vmatpush.msrb.mxu2 %v1274_v18  ;;  %997 = vmatpush.msra.mxu1 %v1282_v19  ;;  %v619_v26 = vpop.f32.mrf.mxu2 }
  0xb5   : > { %v1007_v0 = vld [vmem:[#allocation3 + $0x18] sm:$0xff]  ;;  %v620_v27 = vadd.f32 %v1360_v25, %v619_v26 }
  0xb6   : > { %1269 = vmatmul.msk.f32.vlgmr.msrb.gmra.mxu0 %vm429_vm1, %v788_v63  ;;  %1061 = vmatpush.msra.mxu3 %v1007_v0 }
  0xb7   : > { %890 = vmatpush.msrb.mxu2 %v1273_v20  ;;  %998 = vmatpush.msra.mxu1 %v1281_v21  ;;  %623 = vst.msk [vmem:[#allocation2 + $0x18] sm:$0xff] %vm429_vm1, %v620_v27 }
  0xb9   : > { %891 = vmatpush.msrb.mxu2 %v1272_v22  ;;  %999 = vmatpush.msra.mxu1 %v1280_v23 }
  0xba   : > { %v900_v13 = vld [vmem:[#allocation3 + $0x10] sm:$0xff] }
  0xbb   : > { %954 = vmatpush.msra.mxu0 %v900_v13  ;;  %892 = vmatpush.msrb.mxu2 %v1271_v24 }
  0xbe   : > { %v1005_v38 = vld [vmem:[#allocation2 + $0x18] sm:$0xff] }
 0x12c   : > { %v710_v12 = vpop.f32.mrf.mxu1 }
 0x12d   : > { %v713_v14 = vsel %vm429_vm1, %v710_v12, -inf }
 0x12e   : > { %714 = vmax.xlane.f32.xlu0 %v713_v14 }
 0x133   : > { %v817_v15 = vpop.f32.mrf.mxu0 }
 0x134   : > { %v820_v16 = vsel %vm429_vm1, %v817_v15, -inf }
 0x136   : > { %821 = vmax.xlane.f32.xlu0 %v820_v16 }
 0x1a1   : > { %v715_v28 = vpop.xlane.xlu0 %714 }
 0x1a2   : > { %v716_v29 = vsub.f32 %v710_v12, %v715_v28 }
 0x1a4   : > { %v717_v30 = vmul.f32 1.442695, %v716_v29 }
 0x1a6   : > { %1363 = vpow2.f32 %v717_v30 }
 0x1a9   : > { %v822_v32 = vpop.xlane.xlu0 %821 }
 0x1aa   : > { %v823_v33 = vsub.f32 %v817_v15, %v822_v32 }
 0x1ac   : > { %v1364_v34 = vpop.eup %1363  ;;  %v824_v35 = vmul.f32 1.442695, %v823_v33 }
 0x1ad   : > { %1261 = vmatmul.msk.f32.vlgmr.msra.gmra.mxu2 %vm429_vm1, %v1364_v34  ;;  %v719_v50 = vsel %vm429_vm1, %v1364_v34, 0.0 }
 0x1ae   : > { %1365 = vpow2.f32 %v824_v35  ;;  %1286 = vmatpush.xpose.msk.msra.mxu2 %vm429_vm1, %v1005_v38 }
 0x1b4   : > { %v1366_v36 = vpop.eup %1365 }
 0x1b5   : > { %1270 = vmatmul.msk.f32.vlgmr.msrb.gmra.mxu1 %vm429_vm1, %v1366_v36  ;;  %v826_v37 = vsel %vm429_vm1, %v1366_v36, 0.0  ;;  %1276 = vmatmul.msk.f32.vlgmr.msrb.gmra.mxu2 %vm405_vm0, %v1680_v31 }
 0x1b6   : > { %827 = vadd.xlane.f32.xlu2 %v826_v37 }
 0x1bd   : > { %1285 = vmatmul.msk.f32.vlgmr.msra.gmra.mxu1 %vm405_vm0, %v1680_v31 }
 0x229   : > { %v828_v55 = vpop.xlane.xlu2 %827 }
 0x22a   : > { %v863_v3 = vand.u32 2147483648, %v828_v55  ;;  %vm857_vm3 = vweird.f32 %v828_v55  ;;  %v861_v4 = vand.u32 2147483647, %v828_v55 }
 0x22c   : > { %v864_v6 = vor.u32 1.1754944e-38, %v863_v3  ;;  %vm862_vm5 = vcmp.eq.f32.partialorder %v861_v4, 8.507059e+37 }
 0x230   : > { %v1800_v39 = vpop.f32.mrf.mxu2 }
 0x232   : > { %v849_v40 = vpop.f32.mrf.mxu1 }
 0x238   : > { %v894_v43 = vpop.f32.mrf.mxu2 }
 0x239   : > { %v895_v44 = vadd.f32 %v1362_v41, %v894_v43 }
 0x23a   : > { %v1001_v45 = vpop.f32.mrf.mxu1 }
 0x23b   : > { %v1002_v46 = vadd.f32 %v1361_v42, %v1001_v45  ;;  %1278 = vmatmul.msk.f32.vlgmr.msrb.gmra.mxu3 %vm429_vm1, %v895_v44 }
 0x23d   : > { %1287 = vmatmul.msk.f32.vlgmr.msra.gmra.mxu2 %vm429_vm1, %v1002_v46 }
 0x2be   : > { %v924_v48 = vpop.f32.mrf.mxu3 }
 0x2bf   : > { %v927_v49 = vsel %vm429_vm1, %v924_v48, -inf }
 0x2c0   : > { %v1031_v31 = vpop.f32.mrf.mxu2 }
 0x2c1   : > { %v1034_v47 = vsel %vm429_vm1, %v1031_v31, -inf }
 0x2c2   : > { %1035 = vmax.xlane.f32.xlu1 %v1034_v47 }
 0x2ca   : > { %928 = vmax.xlane.f32.xlu1 %v927_v49 }
 0x2d2   : > { %720 = vadd.xlane.f32.xlu1 %v719_v50 }
 0x335   : > { %v1036_v51 = vpop.xlane.xlu1 %1035 }
 0x336   : > { %v1037_v52 = vsub.f32 %v1031_v31, %v1036_v51 }
 0x338   : > { %v1038_v53 = vmul.f32 1.442695, %v1037_v52 }
 0x33a   : > { %1367 = vpow2.f32 %v1038_v53 }
 0x33b   : > { %1369 = vrcp.f32 %v828_v55 }
 0x33d   : > { %v929_v54 = vpop.xlane.xlu1 %928 }
 0x33e   : > { %v930_v56 = vsub.f32 %v924_v48, %v929_v54 }
 0x340   : > { %v1368_v57 = vpop.eup %1367  ;;  %v931_v58 = vmul.f32 1.442695, %v930_v56 }
 0x341   : > { %1288 = vmatmul.msk.f32.vlgmr.msra.gmra.mxu3 %vm429_vm1, %v1368_v57  ;;  %v1040_v59 = vsel %vm429_vm1, %v1368_v57, 0.0  ;;  %v1370_v60 = vpop.eup %1369 }
 0x342   : > { %1371 = vpow2.f32 %v931_v58  ;;  %1041 = vadd.xlane.f32.xlu0 %v1040_v59  ;;  %v853_v63 = vmul.f32 %v1370_v60, %v828_v55  ;;  %vm858_vm2 = vweird.f32 %v1370_v60 }
 0x343   : > { %vm859_vm4 = vmor %vm857_vm3, %vm858_vm2 }
 0x344   : > { %v854_v0 = vsub.f32 1.0, %v853_v63 }
 0x345   : > { %v721_v36 = vpop.xlane.xlu1 %720 }
 0x346   : > { %v855_v1 = vmul.f32 %v1370_v60, %v854_v0  ;;  %v756_v43 = vand.u32 2147483648, %v721_v36  ;;  %vm750_vm15 = vweird.f32 %v721_v36  ;;  %v754_v44 = vand.u32 2147483647, %v721_v36 }
 0x348   : > { %v1372_v61 = vpop.eup %1371  ;;  %v856_v2 = vadd.f32 %v1370_v60, %v855_v1  ;;  %v757_v46 = vor.u32 1.1754944e-38, %v756_v43  ;;  %vm755_vm3 = vcmp.eq.f32.partialorder %v754_v44, 8.507059e+37 }
 0x349   : > { %1279 = vmatmul.msk.f32.vlgmr.msra.gmra.mxu0 %vm429_vm1, %v1372_v61  ;;  %v933_v62 = vsel %vm429_vm1, %v1372_v61, 0.0 }
 0x34a   : > { %934 = vadd.xlane.f32.xlu2 %v933_v62  ;;  %v860_v5 = vsel %vm859_vm4, %v1370_v60, %v856_v2  ;;  %vm1094_vm4 = vcmask 130048  }
 0x34b   : > { %v865_v7 = vsel %vm862_vm5, %v864_v6, %v860_v5  ;;  %vm1096_vm5 = vcmask 195584  }
 0x34c   : > { %v866_v8 = vmul.f32 %v865_v7, %v849_v40 }
 0x362   : > { %1082 = vrot.lane.b32.xlu2 %v866_v8, %s1459_s20  ;;  %s1393_s20 = sshra.s32 %s1116_s16, 4  ;;  %s1394_s20 = int_to_ptr.hbm [resolvable:$true] %s1393_s20 }
 0x363   : > { %p1400_p1 = scmp.lt.s32.totalorder %s1394_s20, %s1866_s9 }
 0x3b5   : > { %v1042_v9 = vpop.xlane.xlu0 %1041 }
 0x3b6   : > { %1373 = vrcp.f32 %v1042_v9  ;;  %v1077_v14 = vand.u32 2147483648, %v1042_v9  ;;  %v1075_v16 = vand.u32 2147483647, %v1042_v9  ;;  %vm1071_vm7 = vweird.f32 %v1042_v9 }
 0x3b8   : > { %v1078_v19 = vor.u32 1.1754944e-38, %v1077_v14  ;;  %vm1076_vm9 = vcmp.eq.f32.partialorder %v1075_v16, 8.507059e+37 }
 0x3bc   : > { %v1374_v10 = vpop.eup %1373 }
 0x3bd   : > { %v1067_v11 = vmul.f32 %v1374_v10, %v1042_v9  ;;  %v935_v13 = vpop.xlane.xlu2 %934  ;;  %vm1072_vm6 = vweird.f32 %v1374_v10 }
 0x3be   : > { %1375 = vrcp.f32 %v935_v13  ;;  %vm1073_vm8 = vmor %vm1071_vm7, %vm1072_vm6  ;;  %v970_v26 = vand.u32 2147483648, %v935_v13  ;;  %v968_v28 = vand.u32 2147483647, %v935_v13  ;;  %vm964_vm11 = vweird.f32 %v935_v13 }
 0x3bf   : > { %v1068_v12 = vsub.f32 1.0, %v1067_v11  ;;  %1377 = vrcp.f32 %v721_v36 }
 0x3c0   : > { %v971_v30 = vor.u32 1.1754944e-38, %v970_v26  ;;  %vm969_vm13 = vcmp.eq.f32.partialorder %v968_v28, 8.507059e+37 }
 0x3c1   : > { %v1069_v15 = vmul.f32 %v1374_v10, %v1068_v12 }
 0x3c3   : > { %v1070_v17 = vadd.f32 %v1374_v10, %v1069_v15 }
 0x3c4   : > { %v1376_v18 = vpop.eup %1375  ;;  %v1063_v22 = vpop.f32.mrf.mxu3 }
 0x3c5   : > { %v960_v20 = vmul.f32 %v1376_v18, %v935_v13  ;;  %v1074_v21 = vsel %vm1073_vm8, %v1374_v10, %v1070_v17  ;;  %vm965_vm10 = vweird.f32 %v1376_v18  ;;  %v1378_v37 = vpop.eup %1377  ;;  %v1083_v47 = vpop.permute.xlu2 %1082 }
 0x3c6   : > { %v1079_v23 = vsel %vm1076_vm9, %v1078_v19, %v1074_v21  ;;  %vm966_vm12 = vmor %vm964_vm11, %vm965_vm10  ;;  %v956_v33 = vpop.f32.mrf.mxu0  ;;  %v746_v38 = vmul.f32 %v1378_v37, %v721_v36  ;;  %vm751_vm14 = vweird.f32 %v1378_v37 }
 0x3c7   : > { %v961_v24 = vsub.f32 1.0, %v960_v20  ;;  %v1080_v25 = vmul.f32 %v1079_v23, %v1063_v22  ;;  %vm752_vm2 = vmor %vm750_vm15, %vm751_vm14 }
 0x3c8   : > { %v747_v40 = vsub.f32 1.0, %v746_v38 }
 0x3c9   : > { %v962_v27 = vmul.f32 %v1376_v18, %v961_v24  ;;  %1090 = vrot.lane.b32.xlu1 %v1080_v25, %s1460_s1  ;;  %s1395_s1 = scalar_lea.hbm %s1394_s20, 8 }
 0x3ca   : > { %v748_v41 = vmul.f32 %v1378_v37, %v747_v40  ;;  %p1396_p12 = scmp.ne.s32.totalorder %s1394_s20, %s1395_s1  ;;  %p1401_p2 = scmp.lt.s32.totalorder %s1399_s24, %s1395_s1 }
 0x3cb   : > { %v963_v29 = vadd.f32 %v1376_v18, %v962_v27 }
 0x3cc   : > { %v749_v42 = vadd.f32 %v1378_v37, %v748_v41  ;;  %p1397_p13 = pnand %p1396_p12, %p1552_p4  ;;  %p1402_p3 = por %p1401_p2, %p1400_p1 }
 0x3cd   : > { %v967_v32 = vsel %vm966_vm12, %v1376_v18, %v963_v29 }
 0x3ce   : > { %v972_v34 = vsel %vm969_vm13, %v971_v30, %v967_v32  ;;  %v753_v45 = vsel %vm752_vm2, %v1378_v37, %v749_v42  ;;  %p1398_p0 = pneg %p1397_p13 }
 0x3cf   : > { %v973_v35 = vmul.f32 %v972_v34, %v956_v33  ;;  %v758_v31 = vsel %vm755_vm3, %v757_v46, %v753_v45 }
 0x3d0   : > { %v759_v48 = vmul.f32 %v758_v31, %v1800_v39  ;;  %p1403_p5 = pnand %p1402_p3, %p1398_p0 }
 0x3d1   : > { %1086 = vrot.lane.b32.xlu0 %v973_v35, %s1461_s28 }
 0x3d2   : > { %v1093_v49 = vsel %vm429_vm1, %v759_v48, %v1083_v47 }
 0x43b   : > { %v1091_v51 = vpop.permute.xlu1 %1090 }
 0x443   : > { %v1087_v50 = vpop.permute.xlu0 %1086 }
 0x444   : > { %v1095_v52 = vsel %vm1094_vm4, %v1093_v49, %v1087_v50 }
 0x445   : > { %v1097_v53 = vsel %vm1096_vm5, %v1095_v52, %v1091_v51 }
 0x446   : > { %1098 = vst.msk [vmem:[%s371_s15] sm:$0xff] %vm405_vm0, %v1097_v53 }
 0x447   : > { %1406 = shalt.err (!%p1403_p5)
}
 0x448   : > { %1293 = dma.vmem_to_hbm [thread:$0]  (%p1552_p4), %s1114_s27, 128, %s1116_s16, %s1100_s12  }
 0x449 PF: > { %p1299_p6 = scmp.ge.s32.totalorder %s1457_s14, 2  ;;  %s1127_s18 = sand.u32 1, %s1437_s30  }
 0x44a   : > { %s1128_s29 = scalar_lea.sflag [#allocation5], %s1127_s18 }
 0x44b   : > { %p1296_p7 = pnand %p1299_p6, %p1559_p8 }
 0x44d   : > { %p1297_p9 = pneg %p1296_p7 }
 0x44f   : > { %1432 = dma.done.wait (%p1297_p9), %s1128_s29, 128  }
 0x450   : > { %1434 = vsyncadd (%p1297_p9), %s1128_s29, 4294967168  ;;  %s22_s14 = sadd.s32 1, %s1457_s14   ;;  %s1871_s30 = smov %s1441_s10 }
 0x451   : > { %p19_p10 = scmp.ge.s32.totalorder %s22_s14, 4   ;;  %s1872_s10 = smov %s1445_s11 }
 0x452   : > { %s1873_s11 = smov %s1565_s22  ;;  %s1874_s12 = smov %s1453_s13 }
 0x453   : > { %s1875_s13 = smov %s1877_s17  ;;  %21 = sbr.rel (!%p19_p10) target bundleno = 6 (0x6), region = 131 }
 0x458   :  { %1134 = vsyncpa [#allocation5], 1 }
 0x459   :  { %1136 = vsyncpa [#allocation5 + $0x1], 1 }

// kernel: tpu_custom_call.1
= control target key start
LH: loop header
LB: loop body
LE: loop exit
PB: predicated region body
PF: predicated region fallthrough
CT: control target
= control target key end

     0   :  { %s1857_s0 = inlined_call_operand.vmem [shape: f32[2,8,32], index: 0, kind: input, shape index: {}]   ;;  %s1858_s1 = inlined_call_operand.vmem [shape: f32[2,8,32], index: 1, kind: input, shape index: {}]   ;;  %s1859_s2 = inlined_call_operand.vmem [shape: f32[2,8,32], index: 2, kind: input, shape index: {}]   ;;  %s1860_s3 = inlined_call_operand.vmem [shape: f32[4,32,8], index: 3, kind: input, shape index: {}]   ;;  %s1861_s4 = inlined_call_operand.vmem [shape: f32[4,32,8], index: 4, kind: input, shape index: {}]   ;;  %s1862_s5 = inlined_call_operand.vmem [shape: f32[4,32,8], index: 5, kind: input, shape index: {}]   ;;  %s1863_s6 = inlined_call_operand.vmem [shape: f32[4,1,8], index: 6, kind: input, shape index: {}]   ;;  %s1864_s7 = inlined_call_operand.vmem [shape: f32[4,1,8], index: 7, kind: input, shape index: {}]   ;;  %s1865_s8 = inlined_call_operand.vmem [shape: f32[4,1,8], index: 8, kind: input, shape index: {}]   ;;  %s1866_s9 = inlined_call_operand.hbm [shape: f32[2,8,32], index: 9, kind: output, shape index: {}]  }
   0x1   :  { %1867 = sst [smem:[#allocation7_spill]] %s1858_s1 }
   0x2   :  { %14 = vsyncpa [#allocation5], 0 }
   0x3   :  { %16 = vsyncpa [#allocation5 + $0x1], 0  ;;  %s1512_s30 = smov 0   ;;  %s1514_s10 = smov 0  }
   0x4   :  { %s1516_s11 = smov 0   ;;  %s1518_s12 = smov 0  }
   0x5   :  { %s1520_s13 = smov 0   ;;  %s1522_s14 = smov 0  }
   0x6 LB: > { %s1211_s15 = sadd.s32 4294967295, %s1457_s14   ;;  %s1212_s16 = sadd.s32 4294967294, %s1457_s14   ;;  %s1457_s14 = sphi %s1522_s14, %s22_s14   ;;  %s1453_s13 = sphi %s1520_s13, %s1875_s13   ;;  %s1449_s12 = sphi %s1518_s12, %s1874_s12   ;;  %s1445_s11 = sphi %s1516_s11, %s1873_s11   ;;  %s1441_s10 = sphi %s1514_s10, %s1872_s10   ;;  %s1437_s30 = sphi %s1512_s30, %s1871_s30  }
   0x7   : > { %s34_s17 = sadd.s32 1, %s1453_s13  ;;  %s249_s18 = sadd.s32 1, %s1445_s11 }
   0x8   : > { %p36_p0 = scmp.ge.s32.totalorder %s34_s17, 2  ;;  %p259_p1 = scmp.ne.s32.totalorder %s1445_s11, %s1441_s10 }
   0x9   : > { %p260_p2 = scmp.eq.s32.totalorder %s1211_s15, 1  ;;  %p265_p3 = scmp.ne.s32.totalorder %s1441_s10, %s1437_s30 }
   0xa   : > { %s1877_s17 = smov (%p36_p0, %s34_s17), 0  ;;  %p266_p5 = scmp.eq.s32.totalorder %s1212_s16, 1 }
   0xb   : > { %p1552_p4 = por %p260_p2, %p259_p1  ;;  %s244_s20 = ssub.s32 %s1453_s13, %s1877_s17 }
   0xc   : > { %p1215_p6 = scmp.ge.s32.totalorder %s1457_s14, 1  ;;  %p247_p7 = scmp.eq.s32.totalorder %s244_s20, 0 }
   0xd   : > { %p1559_p8 = por %p266_p5, %p265_p3  ;;  %p326_p9 = scmp.lt.s32.totalorder %s1457_s14, 3 }
   0xe   : > { %s1565_s22 = scalar_select %p247_p7, %s1445_s11, %s249_s18  }
   0xf   : > { %p327_p10 = pnand %p1215_p6, %p326_p9 }
  0x10   : > { %p372_p11 = scmp.lt.s32.totalorder (!%p327_p10), %s1449_s12, 1  ;;  %s1870_s1 = sld [smem:[#allocation7_spill]] (!%p327_p10) }
  0x11   : > { %330 = sbr.rel (%p327_p10) target bundleno = 1097 (0x449), region = 56  ;;  %s1290_s24 = sshll.u32 (!%p327_p10), %s1449_s12, 3 }
  0x12   : > { %s1111_s29 = scalar_lea.hbm (!%p327_p10), %s1866_s9, %s1290_s24  ;;  %s1399_s24 = scalar_lea.hbm (!%p327_p10), %s1866_s9, 16 }
  0x13   : > { %s1115_s16 = sshll.u32 (!%p327_p10), %s1111_s29, 4  ;;  %s1116_s16 = int_to_ptr.hbm [resolvable:$true] %s1115_s16 }
  0x16   : > { %v396_v0 = vld [vmem:[%s1861_s4 + $0x18] sm:$0xff]  ;;  %v395_v1 = vld [vmem:[%s1861_s4 + $0x10] sm:$0xff]  ;;  %v394_v5 = vld [vmem:[%s1861_s4 + $0x8] sm:$0xff]  ;;  %s373_s28 = scalar_select %p372_p11, %s1449_s12, 1  ;;  %vm405_vm0 = vcmask 261120   ;;  %vm429_vm1 = vcmask 64512  }
  0x17   : > { %v1225_v2 = vld [vmem:[%s1861_s4 + $0x38] sm:$0xff]  ;;  %421 = vmatpush.msra.mxu0 %v396_v0  ;;  %v1224_v4 = vld [vmem:[%s1861_s4 + $0x30] sm:$0xff]  ;;  %v1223_v7 = vld [vmem:[%s1861_s4 + $0x28] sm:$0xff] }
  0x18   : > { %486 = vmatpush.msra.mxu2 %v1225_v2  ;;  %v1229_v3 = vld [vmem:[%s1862_s5 + $0x38] sm:$0xff]  ;;  %v1228_v6 = vld [vmem:[%s1862_s5 + $0x30] sm:$0xff]  ;;  %v1227_v8 = vld [vmem:[%s1862_s5 + $0x28] sm:$0xff]  ;;  %s1599_s20 = sshll.u32 %s373_s28, 3  ;;  %s1461_s28 = smov 16  }
  0x19   : > { %513 = vmatpush.msra.mxu3 %v1229_v3  ;;  %422 = vmatpush.msra.mxu0 %v395_v1  ;;  %v393_v9 = vld [vmem:[%s1861_s4] sm:$0xff]  ;;  %s382_s27 = scalar_lea.vmem %s1870_s1, %s1599_s20  ;;  %s386_s18 = scalar_lea.vmem %s1859_s2, %s1599_s20  ;;  %v1237_v13 = vld [vmem:[%s1861_s4 + $0x58] sm:$0xff]  ;;  %v1236_v15 = vld [vmem:[%s1861_s4 + $0x50] sm:$0xff] }
  0x1a   : > { %487 = vmatpush.msra.mxu2 %v1224_v4  ;;  %v1222_v10 = vld [vmem:[%s1861_s4 + $0x20] sm:$0xff]  ;;  %v1253_v16 = vld [vmem:[%s1862_s5 + $0x78] sm:$0xff]  ;;  %v1235_v17 = vld [vmem:[%s1861_s4 + $0x48] sm:$0xff]  ;;  %s378_s25 = scalar_lea.vmem %s1857_s0, %s1599_s20  ;;  %s1459_s20 = smov 8  }
  0x1b   : > { %514 = vmatpush.msra.mxu3 %v1228_v6  ;;  %423 = vmatpush.msra.mxu0 %v394_v5  ;;  %v1226_v11 = vld [vmem:[%s1862_s5 + $0x20] sm:$0xff]  ;;  %v1252_v18 = vld [vmem:[%s1862_s5 + $0x70] sm:$0xff]  ;;  %v1251_v20 = vld [vmem:[%s1862_s5 + $0x68] sm:$0xff]  ;;  %s1460_s1 = smov 24  }
  0x1c   : > { %488 = vmatpush.msra.mxu2 %v1223_v7  ;;  %v1615_v12 = vld [vmem:[%s382_s27] sm:$0xff]  ;;  %v400_v21 = vld [vmem:[%s1862_s5 + $0x18] sm:$0xff]  ;;  %v399_v22 = vld [vmem:[%s1862_s5 + $0x10] sm:$0xff] }
  0x1d   : > { %515 = vmatpush.msra.mxu3 %v1227_v8  ;;  %424 = vmatpush.msra.mxu0 %v393_v9  ;;  %v392_v14 = vld [vmem:[%s386_s18] sm:$0xff]  ;;  %v655_v24 = vld [vmem:[%s1860_s3 + $0x18] sm:$0xff]  ;;  %v654_v25 = vld [vmem:[%s1860_s3 + $0x10] sm:$0xff]  ;;  %s369_s18 = sand.u32 1, %s1441_s10  }
  0x1e   : > { %489 = vmatpush.msra.mxu2 %v1222_v10  ;;  %1220 = vmatmul.msk.f32.vlgmr.msra.gmra.mxu0 %vm405_vm0, %v1615_v12  ;;  %v1234_v19 = vld [vmem:[%s1861_s4 + $0x40] sm:$0xff]  ;;  %v1265_v26 = vld [vmem:[%s1860_s3 + $0x38] sm:$0xff]  ;;  %v653_v27 = vld [vmem:[%s1860_s3 + $0x8] sm:$0xff]  ;;  %s1216_s23 = sshll.u32 %s369_s18, 3  ;;  %s1100_s12 = scalar_lea.sflag [#allocation5], %s369_s18 }
  0x1f   : > { %516 = vmatpush.msra.mxu3 %v1226_v11  ;;  %550 = vmatpush.msrb.mxu0 %v1237_v13  ;;  %v1250_v23 = vld [vmem:[%s1862_s5 + $0x60] sm:$0xff]  ;;  %v1264_v28 = vld [vmem:[%s1860_s3 + $0x30] sm:$0xff]  ;;  %v1263_v30 = vld [vmem:[%s1860_s3 + $0x28] sm:$0xff]  ;;  %s371_s15 = scalar_lea.vmem [#allocation4], %s1216_s23 }
  0x20   : > { %1231 = vmatmul.msk.f32.vlgmr.msra.gmra.mxu2 %vm405_vm0, %v1615_v12  ;;  %1233 = vmatmul.msk.f32.vlgmr.msra.gmra.mxu3 %vm405_vm0, %v392_v14  ;;  %v652_v29 = vld [vmem:[%s1860_s3] sm:$0xff]  ;;  %v398_v33 = vld [vmem:[%s1862_s5 + $0x8] sm:$0xff]  ;;  %v1241_v35 = vld [vmem:[%s1862_s5 + $0x58] sm:$0xff]  ;;  %s1113_s27 = sshll.u32 %s371_s15, 4  ;;  %s1114_s27 = int_to_ptr.vmem [resolvable:$true] %s1113_s27 }
  0x21   : > { %551 = vmatpush.msrb.mxu0 %v1236_v15  ;;  %641 = vmatpush.msrb.mxu3 %v1253_v16  ;;  %v1680_v31 = vld [vmem:[%s378_s25] sm:$0xff]  ;;  %v1240_v36 = vld [vmem:[%s1862_s5 + $0x50] sm:$0xff]  ;;  %v1239_v37 = vld [vmem:[%s1862_s5 + $0x48] sm:$0xff] }
  0x22   : > { %450 = vmatpush.msra.mxu1 %v400_v21  ;;  %v1262_v32 = vld [vmem:[%s1860_s3 + $0x20] sm:$0xff]  ;;  %v1249_v1 = vld [vmem:[%s1861_s4 + $0x78] sm:$0xff]  ;;  %v1248_v2 = vld [vmem:[%s1861_s4 + $0x70] sm:$0xff] }
  0x23   : > { %552 = vmatpush.msrb.mxu0 %v1235_v17  ;;  %642 = vmatpush.msrb.mxu3 %v1252_v18  ;;  %v397_v34 = vld [vmem:[%s1862_s5] sm:$0xff]  ;;  %v1247_v3 = vld [vmem:[%s1861_s4 + $0x68] sm:$0xff]  ;;  %v1283_v17 = vld [vmem:[%s1860_s3 + $0x78] sm:$0xff] }
  0x24   : > { %451 = vmatpush.msra.mxu1 %v399_v22  ;;  %v1238_v38 = vld [vmem:[%s1862_s5 + $0x40] sm:$0xff]  ;;  %614 = vmatpush.msrb.mxu2 %v1249_v1  ;;  %v1274_v18 = vld [vmem:[%s1860_s3 + $0x58] sm:$0xff]  ;;  %v1281_v21 = vld [vmem:[%s1860_s3 + $0x68] sm:$0xff] }
  0x25   : > { %553 = vmatpush.msrb.mxu0 %v1234_v19  ;;  %643 = vmatpush.msrb.mxu3 %v1251_v20  ;;  %v1351_v39 = vld [vmem:[%s1864_s7] ss:$0 sm:$0xff]  ;;  %v1352_v42 = vld [vmem:[%s1864_s7 + $0x1] ss:$0 sm:$0xff]  ;;  %v1354_v44 = vld [vmem:[%s1864_s7 + $0x2] ss:$0 sm:$0xff] }
  0x26   : > { %1243 = vmatmul.msk.f32.vlgmr.msrb.gmra.mxu0 %vm405_vm0, %v1615_v12  ;;  %452 = vmatpush.msra.mxu1 %v398_v33  ;;  %v1353_v43 = vld [vmem:[%s1865_s8 + $0x1] ss:$0 sm:$0xff]  ;;  %v1355_v52 = vld [vmem:[%s1865_s8 + $0x3] ss:$0 sm:$0xff]  ;;  %v1356_v53 = vld [vmem:[%s1863_s6] ss:$0 sm:$0xff] }
  0x27   : > { %644 = vmatpush.msrb.mxu3 %v1250_v23  ;;  %676 = vmatpush.msra.mxu0 %v655_v24  ;;  %v1357_v61 = vld [vmem:[%s1863_s6 + $0x1] ss:$0 sm:$0xff]  ;;  %v1358_v5 = vld [vmem:[%s1865_s8] ss:$0 sm:$0xff]  ;;  %v1359_v8 = vld [vmem:[%s1865_s8 + $0x2] ss:$0 sm:$0xff] }
  0x28   : > { %1257 = vmatmul.msk.f32.vlgmr.msrb.gmra.mxu3 %vm405_vm0, %v392_v14  ;;  %453 = vmatpush.msra.mxu1 %v397_v34  ;;  %v1246_v4 = vld [vmem:[%s1861_s4 + $0x60] sm:$0xff]  ;;  %v1282_v19 = vld [vmem:[%s1860_s3 + $0x70] sm:$0xff]  ;;  %v1272_v22 = vld [vmem:[%s1860_s3 + $0x48] sm:$0xff] }
  0x29   : > { %677 = vmatpush.msra.mxu0 %v654_v25  ;;  %782 = vmatpush.msra.mxu3 %v1265_v26  ;;  %v1273_v20 = vld [vmem:[%s1860_s3 + $0x50] sm:$0xff]  ;;  %v1280_v23 = vld [vmem:[%s1860_s3 + $0x60] sm:$0xff] }
  0x2a   : > { %1221 = vmatmul.msk.f32.vlgmr.msra.gmra.mxu1 %vm405_vm0, %v392_v14  ;;  %615 = vmatpush.msrb.mxu2 %v1248_v2  ;;  %v1271_v24 = vld [vmem:[%s1860_s3 + $0x40] sm:$0xff] }
  0x2b   : > { %678 = vmatpush.msra.mxu0 %v653_v27  ;;  %783 = vmatpush.msra.mxu3 %v1264_v28  ;;  %v1360_v25 = vld [vmem:[%s1864_s7 + $0x3] ss:$0 sm:$0xff] }
  0x2c   : > { %577 = vmatpush.msrb.mxu1 %v1241_v35  ;;  %616 = vmatpush.msrb.mxu2 %v1247_v3 }
  0x2d   : > { %679 = vmatpush.msra.mxu0 %v652_v29  ;;  %784 = vmatpush.msra.mxu3 %v1263_v30 }
  0x2e   : > { %1258 = vmatmul.msk.f32.vlgmr.msra.gmra.mxu0 %vm405_vm0, %v1680_v31  ;;  %578 = vmatpush.msrb.mxu1 %v1240_v36 }
  0x2f   : > { %785 = vmatpush.msra.mxu3 %v1262_v32  ;;  %617 = vmatpush.msrb.mxu2 %v1246_v4 }
  0x30   : > { %1267 = vmatmul.msk.f32.vlgmr.msra.gmra.mxu3 %vm405_vm0, %v1680_v31  ;;  %579 = vmatpush.msrb.mxu1 %v1239_v37 }
  0x31   : > { %1255 = vmatmul.msk.f32.vlgmr.msrb.gmra.mxu2 %vm405_vm0, %v1615_v12 }
  0x32   : > { %580 = vmatpush.msrb.mxu1 %v1238_v38 }
  0x33   : > { %1245 = vmatmul.msk.f32.vlgmr.msrb.gmra.mxu1 %vm405_vm0, %v392_v14 }
  0x9b   : > { %v426_v40 = vpop.f32.mrf.mxu0 }
  0x9c   : > { %v427_v41 = vadd.f32 %v1351_v39, %v426_v40 }
  0x9e   : > { %430 = vst.msk [vmem:[#allocation2] sm:$0xff] %vm429_vm1, %v427_v41  ;;  %v1362_v41 = vld [vmem:[%s1863_s6 + $0x2] ss:$0 sm:$0xff] }
  0xa3   : > { %v491_v45 = vpop.f32.mrf.mxu2  ;;  %v518_v47 = vpop.f32.mrf.mxu3 }
  0xa4   : > { %v492_v46 = vadd.f32 %v1352_v42, %v491_v45  ;;  %v555_v48 = vpop.f32.mrf.mxu0  ;;  %v519_v49 = vadd.f32 %v1353_v43, %v518_v47  ;;  %v1361_v42 = vld [vmem:[%s1863_s6 + $0x3] ss:$0 sm:$0xff] }
  0xa5   : > { %v556_v50 = vadd.f32 %v1354_v44, %v555_v48  ;;  %v684_v51 = vld [vmem:[#allocation2] sm:$0xff] }
  0xa6   : > { %495 = vst.msk [vmem:[#allocation2 + $0x8] sm:$0xff] %vm429_vm1, %v492_v46  ;;  %1259 = vmatpush.xpose.msk.msra.mxu1 %vm429_vm1, %v684_v51 }
  0xa7   : > { %522 = vst.msk [vmem:[#allocation3 + $0x8] sm:$0xff] %vm429_vm1, %v519_v49  ;;  %v455_v6 = vpop.f32.mrf.mxu1 }
  0xa8   : > { %559 = vst.msk [vmem:[#allocation2 + $0x10] sm:$0xff] %vm429_vm1, %v556_v50  ;;  %v456_v7 = vadd.f32 %v1358_v5, %v455_v6 }
  0xaa   : > { %458 = vst.msk [vmem:[#allocation3] sm:$0xff] %vm429_vm1, %v456_v7 }
  0xab   : > { %v646_v54 = vpop.f32.mrf.mxu3 }
  0xac   : > { %v681_v55 = vpop.f32.mrf.mxu0  ;;  %v647_v56 = vadd.f32 %v1355_v52, %v646_v54 }
  0xad   : > { %v682_v57 = vadd.f32 %v1356_v53, %v681_v55  ;;  %v791_v58 = vld [vmem:[#allocation2 + $0x8] sm:$0xff] }
  0xae   : > { %1268 = vmatpush.xpose.msk.msrb.mxu0 %vm429_vm1, %v791_v58  ;;  %v793_v59 = vld [vmem:[#allocation3 + $0x8] sm:$0xff]  ;;  %650 = vst.msk [vmem:[#allocation3 + $0x18] sm:$0xff] %vm429_vm1, %v647_v56 }
  0xaf   : > { %1260 = vmatmul.msk.f32.vlgmr.msra.gmra.mxu1 %vm429_vm1, %v682_v57  ;;  %v898_v60 = vld [vmem:[#allocation2 + $0x10] sm:$0xff] }
  0xb0   : > { %847 = vmatpush.msrb.mxu1 %v793_v59  ;;  %1277 = vmatpush.xpose.msk.msrb.mxu3 %vm429_vm1, %v898_v60  ;;  %v582_v9 = vpop.f32.mrf.mxu1 }
  0xb1   : > { %v583_v10 = vadd.f32 %v1359_v8, %v582_v9  ;;  %v685_v11 = vld [vmem:[#allocation3] sm:$0xff] }
  0xb2   : > { %740 = vmatpush.msra.mxu2 %v685_v11  ;;  %996 = vmatpush.msra.mxu1 %v1283_v17 }
  0xb3   : > { %v787_v62 = vpop.f32.mrf.mxu3  ;;  %586 = vst.msk [vmem:[#allocation3 + $0x10] sm:$0xff] %vm429_vm1, %v583_v10 }
  0xb4   : > { %v788_v63 = vadd.f32 %v1357_v61, %v787_v62  ;;  %889 = vmatpush.msrb.mxu2 %v1274_v18  ;;  %997 = vmatpush.msra.mxu1 %v1282_v19  ;;  %v619_v26 = vpop.f32.mrf.mxu2 }
  0xb5   : > { %v1007_v0 = vld [vmem:[#allocation3 + $0x18] sm:$0xff]  ;;  %v620_v27 = vadd.f32 %v1360_v25, %v619_v26 }
  0xb6   : > { %1269 = vmatmul.msk.f32.vlgmr.msrb.gmra.mxu0 %vm429_vm1, %v788_v63  ;;  %1061 = vmatpush.msra.mxu3 %v1007_v0 }
  0xb7   : > { %890 = vmatpush.msrb.mxu2 %v1273_v20  ;;  %998 = vmatpush.msra.mxu1 %v1281_v21  ;;  %623 = vst.msk [vmem:[#allocation2 + $0x18] sm:$0xff] %vm429_vm1, %v620_v27 }
  0xb9   : > { %891 = vmatpush.msrb.mxu2 %v1272_v22  ;;  %999 = vmatpush.msra.mxu1 %v1280_v23 }
  0xba   : > { %v900_v13 = vld [vmem:[#allocation3 + $0x10] sm:$0xff] }
  0xbb   : > { %954 = vmatpush.msra.mxu0 %v900_v13  ;;  %892 = vmatpush.msrb.mxu2 %v1271_v24 }
  0xbe   : > { %v1005_v38 = vld [vmem:[#allocation2 + $0x18] sm:$0xff] }
 0x12c   : > { %v710_v12 = vpop.f32.mrf.mxu1 }
 0x12d   : > { %v713_v14 = vsel %vm429_vm1, %v710_v12, -inf }
 0x12e   : > { %714 = vmax.xlane.f32.xlu0 %v713_v14 }
 0x133   : > { %v817_v15 = vpop.f32.mrf.mxu0 }
 0x134   : > { %v820_v16 = vsel %vm429_vm1, %v817_v15, -inf }
 0x136   : > { %821 = vmax.xlane.f32.xlu0 %v820_v16 }
 0x1a1   : > { %v715_v28 = vpop.xlane.xlu0 %714 }
 0x1a2   : > { %v716_v29 = vsub.f32 %v710_v12, %v715_v28 }
 0x1a4   : > { %v717_v30 = vmul.f32 1.442695, %v716_v29 }
 0x1a6   : > { %1363 = vpow2.f32 %v717_v30 }
 0x1a9   : > { %v822_v32 = vpop.xlane.xlu0 %821 }
 0x1aa   : > { %v823_v33 = vsub.f32 %v817_v15, %v822_v32 }
 0x1ac   : > { %v1364_v34 = vpop.eup %1363  ;;  %v824_v35 = vmul.f32 1.442695, %v823_v33 }
 0x1ad   : > { %1261 = vmatmul.msk.f32.vlgmr.msra.gmra.mxu2 %vm429_vm1, %v1364_v34  ;;  %v719_v50 = vsel %vm429_vm1, %v1364_v34, 0.0 }
 0x1ae   : > { %1365 = vpow2.f32 %v824_v35  ;;  %1286 = vmatpush.xpose.msk.msra.mxu2 %vm429_vm1, %v1005_v38 }
 0x1b4   : > { %v1366_v36 = vpop.eup %1365 }
 0x1b5   : > { %1270 = vmatmul.msk.f32.vlgmr.msrb.gmra.mxu1 %vm429_vm1, %v1366_v36  ;;  %v826_v37 = vsel %vm429_vm1, %v1366_v36, 0.0  ;;  %1276 = vmatmul.msk.f32.vlgmr.msrb.gmra.mxu2 %vm405_vm0, %v1680_v31 }
 0x1b6   : > { %827 = vadd.xlane.f32.xlu2 %v826_v37 }
 0x1bd   : > { %1285 = vmatmul.msk.f32.vlgmr.msra.gmra.mxu1 %vm405_vm0, %v1680_v31 }
 0x229   : > { %v828_v55 = vpop.xlane.xlu2 %827 }
 0x22a   : > { %v863_v3 = vand.u32 2147483648, %v828_v55  ;;  %vm857_vm3 = vweird.f32 %v828_v55  ;;  %v861_v4 = vand.u32 2147483647, %v828_v55 }
 0x22c   : > { %v864_v6 = vor.u32 1.1754944e-38, %v863_v3  ;;  %vm862_vm5 = vcmp.eq.f32.partialorder %v861_v4, 8.507059e+37 }
 0x230   : > { %v1800_v39 = vpop.f32.mrf.mxu2 }
 0x232   : > { %v849_v40 = vpop.f32.mrf.mxu1 }
 0x238   : > { %v894_v43 = vpop.f32.mrf.mxu2 }
 0x239   : > { %v895_v44 = vadd.f32 %v1362_v41, %v894_v43 }
 0x23a   : > { %v1001_v45 = vpop.f32.mrf.mxu1 }
 0x23b   : > { %v1002_v46 = vadd.f32 %v1361_v42, %v1001_v45  ;;  %1278 = vmatmul.msk.f32.vlgmr.msrb.gmra.mxu3 %vm429_vm1, %v895_v44 }
 0x23d   : > { %1287 = vmatmul.msk.f32.vlgmr.msra.gmra.mxu2 %vm429_vm1, %v1002_v46 }
 0x2be   : > { %v924_v48 = vpop.f32.mrf.mxu3 }
 0x2bf   : > { %v927_v49 = vsel %vm429_vm1, %v924_v48, -inf }
 0x2c0   : > { %v1031_v31 = vpop.f32.mrf.mxu2 }
 0x2c1   : > { %v1034_v47 = vsel %vm429_vm1, %v1031_v31, -inf }
 0x2c2   : > { %1035 = vmax.xlane.f32.xlu1 %v1034_v47 }
 0x2ca   : > { %928 = vmax.xlane.f32.xlu1 %v927_v49 }
 0x2d2   : > { %720 = vadd.xlane.f32.xlu1 %v719_v50 }
 0x335   : > { %v1036_v51 = vpop.xlane.xlu1 %1035 }
 0x336   : > { %v1037_v52 = vsub.f32 %v1031_v31, %v1036_v51 }
 0x338   : > { %v1038_v53 = vmul.f32 1.442695, %v1037_v52 }
 0x33a   : > { %1367 = vpow2.f32 %v1038_v53 }
 0x33b   : > { %1369 = vrcp.f32 %v828_v55 }
 0x33d   : > { %v929_v54 = vpop.xlane.xlu1 %928 }
 0x33e   : > { %v930_v56 = vsub.f32 %v924_v48, %v929_v54 }
 0x340   : > { %v1368_v57 = vpop.eup %1367  ;;  %v931_v58 = vmul.f32 1.442695, %v930_v56 }
 0x341   : > { %1288 = vmatmul.msk.f32.vlgmr.msra.gmra.mxu3 %vm429_vm1, %v1368_v57  ;;  %v1040_v59 = vsel %vm429_vm1, %v1368_v57, 0.0  ;;  %v1370_v60 = vpop.eup %1369 }
 0x342   : > { %1371 = vpow2.f32 %v931_v58  ;;  %1041 = vadd.xlane.f32.xlu0 %v1040_v59  ;;  %v853_v63 = vmul.f32 %v1370_v60, %v828_v55  ;;  %vm858_vm2 = vweird.f32 %v1370_v60 }
 0x343   : > { %vm859_vm4 = vmor %vm857_vm3, %vm858_vm2 }
 0x344   : > { %v854_v0 = vsub.f32 1.0, %v853_v63 }
 0x345   : > { %v721_v36 = vpop.xlane.xlu1 %720 }
 0x346   : > { %v855_v1 = vmul.f32 %v1370_v60, %v854_v0  ;;  %v756_v43 = vand.u32 2147483648, %v721_v36  ;;  %vm750_vm15 = vweird.f32 %v721_v36  ;;  %v754_v44 = vand.u32 2147483647, %v721_v36 }
 0x348   : > { %v1372_v61 = vpop.eup %1371  ;;  %v856_v2 = vadd.f32 %v1370_v60, %v855_v1  ;;  %v757_v46 = vor.u32 1.1754944e-38, %v756_v43  ;;  %vm755_vm3 = vcmp.eq.f32.partialorder %v754_v44, 8.507059e+37 }
 0x349   : > { %1279 = vmatmul.msk.f32.vlgmr.msra.gmra.mxu0 %vm429_vm1, %v1372_v61  ;;  %v933_v62 = vsel %vm429_vm1, %v1372_v61, 0.0 }
 0x34a   : > { %934 = vadd.xlane.f32.xlu2 %v933_v62  ;;  %v860_v5 = vsel %vm859_vm4, %v1370_v60, %v856_v2  ;;  %vm1094_vm4 = vcmask 130048  }
 0x34b   : > { %v865_v7 = vsel %vm862_vm5, %v864_v6, %v860_v5  ;;  %vm1096_vm5 = vcmask 195584  }
 0x34c   : > { %v866_v8 = vmul.f32 %v865_v7, %v849_v40 }
 0x362   : > { %1082 = vrot.lane.b32.xlu2 %v866_v8, %s1459_s20  ;;  %s1393_s20 = sshra.s32 %s1116_s16, 4  ;;  %s1394_s20 = int_to_ptr.hbm [resolvable:$true] %s1393_s20 }
 0x363   : > { %p1400_p1 = scmp.lt.s32.totalorder %s1394_s20, %s1866_s9 }
 0x3b5   : > { %v1042_v9 = vpop.xlane.xlu0 %1041 }
 0x3b6   : > { %1373 = vrcp.f32 %v1042_v9  ;;  %v1077_v14 = vand.u32 2147483648, %v1042_v9  ;;  %v1075_v16 = vand.u32 2147483647, %v1042_v9  ;;  %vm1071_vm7 = vweird.f32 %v1042_v9 }
 0x3b8   : > { %v1078_v19 = vor.u32 1.1754944e-38, %v1077_v14  ;;  %vm1076_vm9 = vcmp.eq.f32.partialorder %v1075_v16, 8.507059e+37 }
 0x3bc   : > { %v1374_v10 = vpop.eup %1373 }
 0x3bd   : > { %v1067_v11 = vmul.f32 %v1374_v10, %v1042_v9  ;;  %v935_v13 = vpop.xlane.xlu2 %934  ;;  %vm1072_vm6 = vweird.f32 %v1374_v10 }
 0x3be   : > { %1375 = vrcp.f32 %v935_v13  ;;  %vm1073_vm8 = vmor %vm1071_vm7, %vm1072_vm6  ;;  %v970_v26 = vand.u32 2147483648, %v935_v13  ;;  %v968_v28 = vand.u32 2147483647, %v935_v13  ;;  %vm964_vm11 = vweird.f32 %v935_v13 }
 0x3bf   : > { %v1068_v12 = vsub.f32 1.0, %v1067_v11  ;;  %1377 = vrcp.f32 %v721_v36 }
 0x3c0   : > { %v971_v30 = vor.u32 1.1754944e-38, %v970_v26  ;;  %vm969_vm13 = vcmp.eq.f32.partialorder %v968_v28, 8.507059e+37 }
 0x3c1   : > { %v1069_v15 = vmul.f32 %v1374_v10, %v1068_v12 }
 0x3c3   : > { %v1070_v17 = vadd.f32 %v1374_v10, %v1069_v15 }
 0x3c4   : > { %v1376_v18 = vpop.eup %1375  ;;  %v1063_v22 = vpop.f32.mrf.mxu3 }
 0x3c5   : > { %v960_v20 = vmul.f32 %v1376_v18, %v935_v13  ;;  %v1074_v21 = vsel %vm1073_vm8, %v1374_v10, %v1070_v17  ;;  %vm965_vm10 = vweird.f32 %v1376_v18  ;;  %v1378_v37 = vpop.eup %1377  ;;  %v1083_v47 = vpop.permute.xlu2 %1082 }
 0x3c6   : > { %v1079_v23 = vsel %vm1076_vm9, %v1078_v19, %v1074_v21  ;;  %vm966_vm12 = vmor %vm964_vm11, %vm965_vm10  ;;  %v956_v33 = vpop.f32.mrf.mxu0  ;;  %v746_v38 = vmul.f32 %v1378_v37, %v721_v36  ;;  %vm751_vm14 = vweird.f32 %v1378_v37 }
 0x3c7   : > { %v961_v24 = vsub.f32 1.0, %v960_v20  ;;  %v1080_v25 = vmul.f32 %v1079_v23, %v1063_v22  ;;  %vm752_vm2 = vmor %vm750_vm15, %vm751_vm14 }
 0x3c8   : > { %v747_v40 = vsub.f32 1.0, %v746_v38 }
 0x3c9   : > { %v962_v27 = vmul.f32 %v1376_v18, %v961_v24  ;;  %1090 = vrot.lane.b32.xlu1 %v1080_v25, %s1460_s1  ;;  %s1395_s1 = scalar_lea.hbm %s1394_s20, 8 }
 0x3ca   : > { %v748_v41 = vmul.f32 %v1378_v37, %v747_v40  ;;  %p1396_p12 = scmp.ne.s32.totalorder %s1394_s20, %s1395_s1  ;;  %p1401_p2 = scmp.lt.s32.totalorder %s1399_s24, %s1395_s1 }
 0x3cb   : > { %v963_v29 = vadd.f32 %v1376_v18, %v962_v27 }
 0x3cc   : > { %v749_v42 = vadd.f32 %v1378_v37, %v748_v41  ;;  %p1397_p13 = pnand %p1396_p12, %p1552_p4  ;;  %p1402_p3 = por %p1401_p2, %p1400_p1 }
 0x3cd   : > { %v967_v32 = vsel %vm966_vm12, %v1376_v18, %v963_v29 }
 0x3ce   : > { %v972_v34 = vsel %vm969_vm13, %v971_v30, %v967_v32  ;;  %v753_v45 = vsel %vm752_vm2, %v1378_v37, %v749_v42  ;;  %p1398_p0 = pneg %p1397_p13 }
 0x3cf   : > { %v973_v35 = vmul.f32 %v972_v34, %v956_v33  ;;  %v758_v31 = vsel %vm755_vm3, %v757_v46, %v753_v45 }
 0x3d0   : > { %v759_v48 = vmul.f32 %v758_v31, %v1800_v39  ;;  %p1403_p5 = pnand %p1402_p3, %p1398_p0 }
 0x3d1   : > { %1086 = vrot.lane.b32.xlu0 %v973_v35, %s1461_s28 }
 0x3d2   : > { %v1093_v49 = vsel %vm429_vm1, %v759_v48, %v1083_v47 }
 0x43b   : > { %v1091_v51 = vpop.permute.xlu1 %1090 }
 0x443   : > { %v1087_v50 = vpop.permute.xlu0 %1086 }
 0x444   : > { %v1095_v52 = vsel %vm1094_vm4, %v1093_v49, %v1087_v50 }
 0x445   : > { %v1097_v53 = vsel %vm1096_vm5, %v1095_v52, %v1091_v51 }
 0x446   : > { %1098 = vst.msk [vmem:[%s371_s15] sm:$0xff] %vm405_vm0, %v1097_v53 }
 0x447   : > { %1406 = shalt.err (!%p1403_p5)
}
 0x448   : > { %1293 = dma.vmem_to_hbm [thread:$0]  (%p1552_p4), %s1114_s27, 128, %s1116_s16, %s1100_s12  }
 0x449 PF: > { %p1299_p6 = scmp.ge.s32.totalorder %s1457_s14, 2  ;;  %s1127_s18 = sand.u32 1, %s1437_s30  }
 0x44a   : > { %s1128_s29 = scalar_lea.sflag [#allocation5], %s1127_s18 }
 0x44b   : > { %p1296_p7 = pnand %p1299_p6, %p1559_p8 }
 0x44d   : > { %p1297_p9 = pneg %p1296_p7 }
 0x44f   : > { %1432 = dma.done.wait (%p1297_p9), %s1128_s29, 128  }
 0x450   : > { %1434 = vsyncadd (%p1297_p9), %s1128_s29, 4294967168  ;;  %s22_s14 = sadd.s32 1, %s1457_s14   ;;  %s1871_s30 = smov %s1441_s10 }
 0x451   : > { %p19_p10 = scmp.ge.s32.totalorder %s22_s14, 4   ;;  %s1872_s10 = smov %s1445_s11 }
 0x452   : > { %s1873_s11 = smov %s1565_s22  ;;  %s1874_s12 = smov %s1453_s13 }
 0x453   : > { %s1875_s13 = smov %s1877_s17  ;;  %21 = sbr.rel (!%p19_p10) target bundleno = 6 (0x6), region = 131 }
 0x458   :  { %1134 = vsyncpa [#allocation5], 1 }
 0x459   :  { %1136 = vsyncpa [#allocation5 + $0x1], 1 }

</bundles_post_ra>
